<compile_context>
chip_gen: v5e
topology: v5e:2x2
jax: 0.10.0
libtpu: 0.0.40
codegen_flags: <defaults>
</compile_context>

<pallas_src>
import functools

import jax
import jax.numpy as jnp
from jax.experimental import pallas as pl
from jax.experimental.pallas import tpu as pltpu


def _sigmoid(x):
    # Sigmoid via EUP tanh (no VPU divide); f32 in / f32 out.
    return 0.5 * (jnp.tanh(0.5 * x) + 1.0)


def textlstm_kernel(x_ref, win_ref, b_ref, whh_ref, attnw_ref, fcw_ref,
                    fcb_ref, tgt_ref, loss_ref, ix_scr, h_scr, *, T, BB, H):
    G2 = 2 * H                      # per-gate width (fwd | bwd packed)

    # ---- Hoisted input projection: both directions, all timesteps, ONE bf16
    # MXU matmul (f32 accumulate).  Row t*BB+b holds, in gate-grouped column
    # order (i_f,i_b,f_f,f_b,g_f,g_b,o_f,o_b):
    #   forward  pre-activations for time t       (the *_f columns)
    #   backward pre-activations for time T-1-t   (the *_b columns)
    # because xcat row (t,b) = [x[t,b] | x[T-1-t,b]] and W_in is block-diagonal.
    x2 = x_ref[...].reshape(T * BB, x_ref.shape[-1])          # bf16 [T*BB, 2E]
    ix_scr[...] = jnp.dot(x2, win_ref[...],
                          preferred_element_type=jnp.float32) + b_ref[...]

    whh = whh_ref[...]                                        # bf16 [2H, 8H]

    # ---- Fused bidirectional recurrence.  State stays packed as
    # [BB, 2H] = [h_fwd | h_bwd]; the gate-grouped fused weights let the whole
    # elementwise update run at full [BB, 2H] width (no per-direction splits,
    # no concat).  tanh only touches the g gate.
    h = jnp.zeros((BB, 2 * H), jnp.float32)
    c = jnp.zeros((BB, 2 * H), jnp.float32)
    for i in range(T):              # T is small and static -> fully unrolled
        if i == 0:
            gates = ix_scr[0:BB, :]                 # h == 0: skip the matmul
        else:
            rec = jnp.dot(h.astype(jnp.bfloat16), whh,
                          preferred_element_type=jnp.float32)         # [BB, 8H]
            gates = rec + ix_scr[i * BB:(i + 1) * BB, :]   # 16-row aligned slab
        ig = _sigmoid(gates[:, 0 * G2:1 * G2])
        fg = _sigmoid(gates[:, 1 * G2:2 * G2])
        gg = jnp.tanh(gates[:, 2 * G2:3 * G2])
        og = _sigmoid(gates[:, 3 * G2:4 * G2])
        c = fg * c + ig * gg
        h = og * jnp.tanh(c)
        h_scr[i] = h       # side store, off the recurrence dependence chain

    # ---- Attention: online (flash-style) softmax over time.
    #   y[t] = h_fwd(t) + h_bwd(t)
    #        = h_scr[t][:, :H] + h_scr[T-1-t][:, H:]
    # Running max / denom / weighted sum -> O(1) vregs in T.
    # TODO(synk): the Attn module source is not provided; implemented as the
    # standard alpha = softmax_t(tanh(y) . w) text-classification attention.
    aw = attnw_ref[...]                                       # [1, H]
    m = jnp.full((BB, 1), -jnp.inf, jnp.float32)
    d = jnp.zeros((BB, 1), jnp.float32)
    racc = jnp.zeros((BB, H), jnp.float32)
    for t in range(T):
        y_t = h_scr[t][:, :H] + h_scr[T - 1 - t][:, H:]
        s_t = jnp.sum(jnp.tanh(y_t) * aw, axis=1, keepdims=True)
        m_new = jnp.maximum(m, s_t)
        corr = jnp.exp(m - m_new)
        e_t = jnp.exp(s_t - m_new)
        d = corr * d + e_t
        racc = corr * racc + e_t * y_t
        m = m_new
    r = racc / d            # exact divide: denom >= 1; avoids stacking approx
    hvec = jnp.tanh(r)      # reciprocal error on top of bf16 rounding

    logits = jnp.dot(hvec.astype(jnp.bfloat16), fcw_ref[...],
                     preferred_element_type=jnp.float32) + fcb_ref[...]  # [BB,C]
    # TODO(synk): fc_dropout is identity here (eval/inference semantics).

    tgt = tgt_ref[...]
    z = logits
    # BCEWithLogitsLoss (numerically stable).  Per-sample sums; the final mean
    # over the full batch is a trivial cross-chunk reduction in the wrapper
    # (required anyway since batch chunks run as parallel grid steps).
    bce = jnp.maximum(z, 0.0) - z * tgt + jnp.log(1.0 + jnp.exp(-jnp.abs(z)))
    loss_ref[...] = jnp.sum(bce, axis=1, keepdims=True)


def _route_gates(w, H, direction):
    """Map a [K, 4H] (i,f,g,o)-ordered weight into the gate-grouped fused
    [K, 8H] layout (i_f,i_b,f_f,f_b,g_f,g_b,o_f,o_b).  `direction` 0 fills the
    *_f columns, 1 fills the *_b columns (other half zero)."""
    K = w.shape[0]
    w4 = w.reshape(K, 4, 1, H)
    z = jnp.zeros_like(w4)
    parts = (w4, z) if direction == 0 else (z, w4)
    return jnp.concatenate(parts, axis=2).reshape(K, 8 * H)


def text_lstm_loss(x_emb, p, tgt, *, batch_block=16):
    """x_emb: [T, B, E] time-major embedded tokens; tgt: [B, C] multi-hot."""
    T, B, E = x_emb.shape
    H = p['w_hh_f_t'].shape[0]
    C = tgt.shape[1]
    BB = batch_block
    assert B % BB == 0, (B, BB)
    nb = B // BB

    # ---- Parameter fusion (plain-JAX glue, done once).
    # TODO(synk): drop the zero blocks of w_in / w_hh once 2E (resp. 2H)
    # exceeds one MXU K-tile (128 on v5e, 256 on v6e/v7x).
    w_in = jnp.concatenate([_route_gates(p['w_ih_f_t'], H, 0),
                            _route_gates(p['w_ih_b_t'], H, 1)], axis=0)  # [2E,8H]
    b_cat = _route_gates(p['b_f'], H, 0) + _route_gates(p['b_b'], H, 1)  # [1, 8H]
    w_hh = jnp.concatenate([_route_gates(p['w_hh_f_t'], H, 0),
                            _route_gates(p['w_hh_b_t'], H, 1)], axis=0)  # [2H,8H]

    # Pair each timestep with its time-reversed partner so the backward
    # direction needs no per-step reindexing inside the kernel.
    xcat = jnp.concatenate([x_emb, x_emb[::-1]], axis=-1)                # [T,B,2E]

    # bf16 MXU operands (f32 accumulation in-kernel); elementwise math stays f32.
    xcat = xcat.astype(jnp.bfloat16)
    w_in = w_in.astype(jnp.bfloat16)
    w_hh = w_hh.astype(jnp.bfloat16)
    fc_w = p['fc_w_t'].astype(jnp.bfloat16)

    full = lambda a: pl.BlockSpec(a.shape, lambda i: (0,) * a.ndim)
    grid_spec = pltpu.PrefetchScalarGridSpec(
        num_scalar_prefetch=0,
        grid=(nb,),
        in_specs=[
            pl.BlockSpec((T, BB, 2 * E), lambda i: (0, i, 0)),   # xcat chunk
            full(w_in), full(b_cat), full(w_hh),
            full(p['attn_w']), full(fc_w), full(p['fc_b']),
            pl.BlockSpec((BB, C), lambda i: (i, 0)),             # targets chunk
        ],
        out_specs=pl.BlockSpec((BB, 1), lambda i: (i, 0)),       # per-sample BCE sums
        scratch_shapes=[
            pltpu.VMEM((T * BB, 8 * H), jnp.float32),   # hoisted gate pre-acts
            pltpu.VMEM((T, BB, 2 * H), jnp.float32),    # packed hidden history
        ],
    )
    kern = functools.partial(textlstm_kernel, T=T, BB=BB, H=H)
    per_row = pl.pallas_call(
        kern,
        out_shape=jax.ShapeDtypeStruct((B, 1), jnp.float32),
        grid_spec=grid_spec,
        compiler_params=pltpu.CompilerParams(
            dimension_semantics=("parallel",),   # batch chunks -> both TCs on v7x
            vmem_limit_bytes=32 * 1024 * 1024,
        ),
    )(xcat, w_in, b_cat, w_hh, p['attn_w'], fc_w, p['fc_b'], tgt)
    return jnp.sum(per_row) / (B * C)


def reference_loss(x_emb, p, tgt):
    """Pure-JAX f32 reference with identical math (for correctness check)."""
    T, B, _ = x_emb.shape
    H = p['w_hh_f_t'].shape[0]

    def cell(x_t, h, c, wih, whh, b):
        gates = x_t @ wih + h @ whh + b
        i = jax.nn.sigmoid(gates[:, :H])
        f = jax.nn.sigmoid(gates[:, H:2 * H])
        g = jnp.tanh(gates[:, 2 * H:3 * H])
        o = jax.nn.sigmoid(gates[:, 3 * H:])
        c = f * c + i * g
        h = o * jnp.tanh(c)
        return h, c

    h = c = jnp.zeros((B, H), jnp.float32)
    yf = []
    for t in range(T):
        h, c = cell(x_emb[t], h, c, p['w_ih_f_t'], p['w_hh_f_t'], p['b_f'])
        yf.append(h)
    h = c = jnp.zeros((B, H), jnp.float32)
    yb = [None] * T
    for i in range(T):
        t = T - 1 - i
        h, c = cell(x_emb[t], h, c, p['w_ih_b_t'], p['w_hh_b_t'], p['b_b'])
        yb[t] = h
    y = jnp.stack(yf) + jnp.stack(yb)        # [T, B, H]
    M = jnp.tanh(y)
    scores = jnp.sum(M * p['attn_w'].reshape(1, 1, H), axis=-1)
    alpha = jax.nn.softmax(scores, axis=0)
    r = jnp.sum(alpha[:, :, None] * y, axis=0)
    hv = jnp.tanh(r)
    z = hv @ p['fc_w_t'] + p['fc_b']
    bce = jnp.maximum(z, 0.0) - z * tgt + jnp.log1p(jnp.exp(-jnp.abs(z)))
    return jnp.mean(bce)


def init_params(key, V, E, H, C):
    ks = jax.random.split(key, 10)
    s = 1.0 / float(H) ** 0.5

    def u(k, shape):
        return jax.random.uniform(k, shape, jnp.float32, -s, s)

    emb = jax.random.normal(ks[0], (V, E), jnp.float32)
    params = dict(
        w_ih_f_t=u(ks[1], (E, 4 * H)),   # forward W_ih^T   (i,f,g,o)
        w_hh_f_t=u(ks[2], (H, 4 * H)),   # forward W_hh^T
        b_f=u(ks[3], (1, 4 * H)),        # forward (b_ih + b_hh)
        w_ih_b_t=u(ks[4], (E, 4 * H)),   # backward W_ih^T
        w_hh_b_t=u(ks[5], (H, 4 * H)),   # backward W_hh^T
        b_b=u(ks[6], (1, 4 * H)),        # backward (b_ih + b_hh)
        attn_w=u(ks[7], (1, H)),         # attention vector
        fc_w_t=u(ks[8], (H, C)),         # fc weight^T
        fc_b=u(ks[9], (1, C)),           # fc bias
    )
    return emb, params


if __name__ == "__main__":
    B, T, V, E, H, C = 32, 8, 50, 16, 32, 4   # batch, seq, vocab, emb, hidden, classes
    key = jax.random.PRNGKey(0)
    k_par, k_src, k_tgt = jax.random.split(key, 3)

    emb_table, params = init_params(k_par, V, E, H, C)
    src = jax.random.randint(k_src, (B, T), 0, V)                       # token ids
    tgt = jax.random.bernoulli(k_tgt, 0.5, (B, C)).astype(jnp.float32)  # multi-hot targets

    # Glue: embedding gather + transpose to the kernel's time-major layout.
    # TODO(synk): the nn.Embedding gather stays in XLA (a Pallas DMA gather is
    # not worthwhile at this table size).
    x_emb = jnp.take(emb_table, src, axis=0)     # [B, T, E]
    x_emb = jnp.transpose(x_emb, (1, 0, 2))      # [T, B, E]

    loss = text_lstm_loss(x_emb, params, tgt)
    loss = jax.block_until_ready(loss)

    ref = reference_loss(x_emb, params, tgt)
    assert bool(jnp.isfinite(loss))
    # bf16 MXU operands (f32 accumulation) vs the pure-f32 reference -> keep a
    # slightly looser parity bound than the old all-f32 kernel.
    assert abs(float(loss) - float(ref)) < 5e-3 * (1.0 + abs(float(ref))), \
        (float(loss), float(ref))

    print("KERNEL_OK")
</pallas_src>

<mosaic_0001>
module attributes {stable_mosaic.version = 11 : i64} {
  func.func @textlstm_kernel(%arg0: i32, %arg1: memref<8x16x32xbf16, #tpu.memory_space<vmem>>, %arg2: memref<32x256xbf16, #tpu.memory_space<vmem>>, %arg3: memref<1x256xf32, #tpu.memory_space<vmem>>, %arg4: memref<64x256xbf16, #tpu.memory_space<vmem>>, %arg5: memref<1x32xf32, #tpu.memory_space<vmem>>, %arg6: memref<32x4xbf16, #tpu.memory_space<vmem>>, %arg7: memref<1x4xf32, #tpu.memory_space<vmem>>, %arg8: memref<16x4xf32, #tpu.memory_space<vmem>>, %arg9: memref<16x1xf32, #tpu.memory_space<vmem>>, %arg10: memref<128x256xf32, #tpu.memory_space<vmem>>, %arg11: memref<8x16x64xf32, #tpu.memory_space<vmem>>) attributes {dimension_semantics = [#tpu.dimension_semantics<parallel>], iteration_bounds = array<i64: 2>, scalar_prefetch = 0 : i64, scratch_operands = 2 : i64, tpu.core_type = #tpu.core_type<tc>, window_params = [{transform_indices = @transform_0, window_bounds = array<i64: 8, 16, 32>}, {pipeline_mode = #tpu.pipeline_mode<synchronous>, transform_indices = @transform_1, window_bounds = array<i64: 32, 256>}, {pipeline_mode = #tpu.pipeline_mode<synchronous>, transform_indices = @transform_2, window_bounds = array<i64: 1, 256>}, {pipeline_mode = #tpu.pipeline_mode<synchronous>, transform_indices = @transform_3, window_bounds = array<i64: 64, 256>}, {pipeline_mode = #tpu.pipeline_mode<synchronous>, transform_indices = @transform_4, window_bounds = array<i64: 1, 32>}, {pipeline_mode = #tpu.pipeline_mode<synchronous>, transform_indices = @transform_5, window_bounds = array<i64: 32, 4>}, {pipeline_mode = #tpu.pipeline_mode<synchronous>, transform_indices = @transform_6, window_bounds = array<i64: 1, 4>}, {transform_indices = @transform_7, window_bounds = array<i64: 16, 4>}, {transform_indices = @transform_8, window_bounds = array<i64: 16, 1>}]} {
    %c0 = arith.constant 0 : index
    %c0_0 = arith.constant 0 : index
    %c0_1 = arith.constant 0 : index
    %0 = vector.load %arg1[%c0, %c0_0, %c0_1] : memref<8x16x32xbf16, #tpu.memory_space<vmem>>, vector<8x16x32xbf16>
    %1 = vector.shape_cast %0 : vector<8x16x32xbf16> to vector<128x32xbf16>
    %c0_2 = arith.constant 0 : index
    %c0_3 = arith.constant 0 : index
    %2 = vector.load %arg2[%c0_2, %c0_3] : memref<32x256xbf16, #tpu.memory_space<vmem>>, vector<32x256xbf16>
    %cst = arith.constant dense<0.000000e+00> : vector<128x256xf32>
    %3 = tpu.matmul %1, %2, %cst {dimension_numbers = #tpu.dot_dimension_numbers<[1], [0], [0], [1], [0, 0, 1, 1], [], []>} : vector<128x32xbf16>, vector<32x256xbf16>, vector<128x256xf32> -> vector<128x256xf32>
    %c0_4 = arith.constant 0 : index
    %c0_5 = arith.constant 0 : index
    %4 = vector.load %arg3[%c0_4, %c0_5] : memref<1x256xf32, #tpu.memory_space<vmem>>, vector<1x256xf32>
    %5 = vector.broadcast %4 : vector<1x256xf32> to vector<128x256xf32>
    %6 = arith.addf %3, %5 : vector<128x256xf32>
    %c0_6 = arith.constant 0 : index
    %c0_7 = arith.constant 0 : index
    %7 = vector.load %arg10[%c0_6, %c0_7] : memref<128x256xf32, #tpu.memory_space<vmem>>, vector<128x256xf32>
    tpu.vector_store %arg10[%c0_6, %c0_7], %6 {strides = array<i32>} : memref<128x256xf32, #tpu.memory_space<vmem>>, vector<128x256xf32>,
    %c0_8 = arith.constant 0 : index
    %c0_9 = arith.constant 0 : index
    %8 = vector.load %arg4[%c0_8, %c0_9] : memref<64x256xbf16, #tpu.memory_space<vmem>>, vector<64x256xbf16>
    %cst_10 = arith.constant 0.000000e+00 : f32
    %9 = vector.broadcast %cst_10 : f32 to vector<16x64xf32>
    %c0_11 = arith.constant 0 : index
    %c0_12 = arith.constant 0 : index
    %10 = vector.load %arg10[%c0_11, %c0_12] : memref<128x256xf32, #tpu.memory_space<vmem>>, vector<16x256xf32>
    %11 = vector.extract_strided_slice %10 {offsets = [0, 0], sizes = [16, 64], strides = [1, 1]} : vector<16x256xf32> to vector<16x64xf32>
    %cst_13 = arith.constant 5.000000e-01 : f32
    %12 = vector.broadcast %cst_13 : f32 to vector<16x64xf32>
    %13 = arith.mulf %12, %11 : vector<16x64xf32>
    %14 = math.tanh %13 : vector<16x64xf32>
    %cst_14 = arith.constant 1.000000e+00 : f32
    %15 = vector.broadcast %cst_14 : f32 to vector<16x64xf32>
    %16 = arith.addf %14, %15 : vector<16x64xf32>
    %cst_15 = arith.constant 5.000000e-01 : f32
    %17 = vector.broadcast %cst_15 : f32 to vector<16x64xf32>
    %18 = arith.mulf %17, %16 : vector<16x64xf32>
    %19 = vector.extract_strided_slice %10 {offsets = [0, 64], sizes = [16, 64], strides = [1, 1]} : vector<16x256xf32> to vector<16x64xf32>
    %cst_16 = arith.constant 5.000000e-01 : f32
    %20 = vector.broadcast %cst_16 : f32 to vector<16x64xf32>
    %21 = arith.mulf %20, %19 : vector<16x64xf32>
    %22 = math.tanh %21 : vector<16x64xf32>
    %cst_17 = arith.constant 1.000000e+00 : f32
    %23 = vector.broadcast %cst_17 : f32 to vector<16x64xf32>
    %24 = arith.addf %22, %23 : vector<16x64xf32>
    %cst_18 = arith.constant 5.000000e-01 : f32
    %25 = vector.broadcast %cst_18 : f32 to vector<16x64xf32>
    %26 = arith.mulf %25, %24 : vector<16x64xf32>
    %27 = vector.extract_strided_slice %10 {offsets = [0, 128], sizes = [16, 64], strides = [1, 1]} : vector<16x256xf32> to vector<16x64xf32>
    %28 = math.tanh %27 : vector<16x64xf32>
    %29 = vector.extract_strided_slice %10 {offsets = [0, 192], sizes = [16, 64], strides = [1, 1]} : vector<16x256xf32> to vector<16x64xf32>
    %cst_19 = arith.constant 5.000000e-01 : f32
    %30 = vector.broadcast %cst_19 : f32 to vector<16x64xf32>
    %31 = arith.mulf %30, %29 : vector<16x64xf32>
    %32 = math.tanh %31 : vector<16x64xf32>
    %cst_20 = arith.constant 1.000000e+00 : f32
    %33 = vector.broadcast %cst_20 : f32 to vector<16x64xf32>
    %34 = arith.addf %32, %33 : vector<16x64xf32>
    %cst_21 = arith.constant 5.000000e-01 : f32
    %35 = vector.broadcast %cst_21 : f32 to vector<16x64xf32>
    %36 = arith.mulf %35, %34 : vector<16x64xf32>
    %37 = arith.mulf %26, %9 : vector<16x64xf32>
    %38 = arith.mulf %18, %28 : vector<16x64xf32>
    %39 = arith.addf %37, %38 : vector<16x64xf32>
    %40 = math.tanh %39 : vector<16x64xf32>
    %41 = arith.mulf %36, %40 : vector<16x64xf32>
    %c0_22 = arith.constant 0 : index
    %c0_23 = arith.constant 0 : index
    %c0_24 = arith.constant 0 : index
    %42 = vector.load %arg11[%c0_22, %c0_23, %c0_24] : memref<8x16x64xf32, #tpu.memory_space<vmem>>, vector<1x16x64xf32>
    %43 = vector.shape_cast %42 : vector<1x16x64xf32> to vector<16x64xf32>
    %44 = vector.shape_cast %41 : vector<16x64xf32> to vector<1x16x64xf32>
    tpu.vector_store %arg11[%c0_22, %c0_23, %c0_24], %44 {strides = array<i32>} : memref<8x16x64xf32, #tpu.memory_space<vmem>>, vector<1x16x64xf32>,
    %45 = arith.truncf %41 : vector<16x64xf32> to vector<16x64xbf16>
    %cst_25 = arith.constant dense<0.000000e+00> : vector<16x256xf32>
    %46 = tpu.matmul %45, %8, %cst_25 {dimension_numbers = #tpu.dot_dimension_numbers<[1], [0], [0], [1], [0, 0, 1, 1], [], []>} : vector<16x64xbf16>, vector<64x256xbf16>, vector<16x256xf32> -> vector<16x256xf32>
    %c16 = arith.constant 16 : index
    %c0_26 = arith.constant 0 : index
    %47 = vector.load %arg10[%c16, %c0_26] : memref<128x256xf32, #tpu.memory_space<vmem>>, vector<16x256xf32>
    %48 = arith.addf %46, %47 : vector<16x256xf32>
    %49 = vector.extract_strided_slice %48 {offsets = [0, 0], sizes = [16, 64], strides = [1, 1]} : vector<16x256xf32> to vector<16x64xf32>
    %cst_27 = arith.constant 5.000000e-01 : f32
    %50 = vector.broadcast %cst_27 : f32 to vector<16x64xf32>
    %51 = arith.mulf %50, %49 : vector<16x64xf32>
    %52 = math.tanh %51 : vector<16x64xf32>
    %cst_28 = arith.constant 1.000000e+00 : f32
    %53 = vector.broadcast %cst_28 : f32 to vector<16x64xf32>
    %54 = arith.addf %52, %53 : vector<16x64xf32>
    %cst_29 = arith.constant 5.000000e-01 : f32
    %55 = vector.broadcast %cst_29 : f32 to vector<16x64xf32>
    %56 = arith.mulf %55, %54 : vector<16x64xf32>
    %57 = vector.extract_strided_slice %48 {offsets = [0, 64], sizes = [16, 64], strides = [1, 1]} : vector<16x256xf32> to vector<16x64xf32>
    %cst_30 = arith.constant 5.000000e-01 : f32
    %58 = vector.broadcast %cst_30 : f32 to vector<16x64xf32>
    %59 = arith.mulf %58, %57 : vector<16x64xf32>
    %60 = math.tanh %59 : vector<16x64xf32>
    %cst_31 = arith.constant 1.000000e+00 : f32
    %61 = vector.broadcast %cst_31 : f32 to vector<16x64xf32>
    %62 = arith.addf %60, %61 : vector<16x64xf32>
    %cst_32 = arith.constant 5.000000e-01 : f32
    %63 = vector.broadcast %cst_32 : f32 to vector<16x64xf32>
    %64 = arith.mulf %63, %62 : vector<16x64xf32>
    %65 = vector.extract_strided_slice %48 {offsets = [0, 128], sizes = [16, 64], strides = [1, 1]} : vector<16x256xf32> to vector<16x64xf32>
    %66 = math.tanh %65 : vector<16x64xf32>
    %67 = vector.extract_strided_slice %48 {offsets = [0, 192], sizes = [16, 64], strides = [1, 1]} : vector<16x256xf32> to vector<16x64xf32>
    %cst_33 = arith.constant 5.000000e-01 : f32
    %68 = vector.broadcast %cst_33 : f32 to vector<16x64xf32>
    %69 = arith.mulf %68, %67 : vector<16x64xf32>
    %70 = math.tanh %69 : vector<16x64xf32>
    %cst_34 = arith.constant 1.000000e+00 : f32
    %71 = vector.broadcast %cst_34 : f32 to vector<16x64xf32>
    %72 = arith.addf %70, %71 : vector<16x64xf32>
    %cst_35 = arith.constant 5.000000e-01 : f32
    %73 = vector.broadcast %cst_35 : f32 to vector<16x64xf32>
    %74 = arith.mulf %73, %72 : vector<16x64xf32>
    %75 = arith.mulf %64, %39 : vector<16x64xf32>
    %76 = arith.mulf %56, %66 : vector<16x64xf32>
    %77 = arith.addf %75, %76 : vector<16x64xf32>
    %78 = math.tanh %77 : vector<16x64xf32>
    %79 = arith.mulf %74, %78 : vector<16x64xf32>
    %c1 = arith.constant 1 : index
    %c0_36 = arith.constant 0 : index
    %c0_37 = arith.constant 0 : index
    %80 = vector.load %arg11[%c1, %c0_36, %c0_37] : memref<8x16x64xf32, #tpu.memory_space<vmem>>, vector<1x16x64xf32>
    %81 = vector.shape_cast %80 : vector<1x16x64xf32> to vector<16x64xf32>
    %82 = vector.shape_cast %79 : vector<16x64xf32> to vector<1x16x64xf32>
    tpu.vector_store %arg11[%c1, %c0_36, %c0_37], %82 {strides = array<i32>} : memref<8x16x64xf32, #tpu.memory_space<vmem>>, vector<1x16x64xf32>,
    %83 = arith.truncf %79 : vector<16x64xf32> to vector<16x64xbf16>
    %cst_38 = arith.constant dense<0.000000e+00> : vector<16x256xf32>
    %84 = tpu.matmul %83, %8, %cst_38 {dimension_numbers = #tpu.dot_dimension_numbers<[1], [0], [0], [1], [0, 0, 1, 1], [], []>} : vector<16x64xbf16>, vector<64x256xbf16>, vector<16x256xf32> -> vector<16x256xf32>
    %c32 = arith.constant 32 : index
    %c0_39 = arith.constant 0 : index
    %85 = vector.load %arg10[%c32, %c0_39] : memref<128x256xf32, #tpu.memory_space<vmem>>, vector<16x256xf32>
    %86 = arith.addf %84, %85 : vector<16x256xf32>
    %87 = vector.extract_strided_slice %86 {offsets = [0, 0], sizes = [16, 64], strides = [1, 1]} : vector<16x256xf32> to vector<16x64xf32>
    %cst_40 = arith.constant 5.000000e-01 : f32
    %88 = vector.broadcast %cst_40 : f32 to vector<16x64xf32>
    %89 = arith.mulf %88, %87 : vector<16x64xf32>
    %90 = math.tanh %89 : vector<16x64xf32>
    %cst_41 = arith.constant 1.000000e+00 : f32
    %91 = vector.broadcast %cst_41 : f32 to vector<16x64xf32>
    %92 = arith.addf %90, %91 : vector<16x64xf32>
    %cst_42 = arith.constant 5.000000e-01 : f32
    %93 = vector.broadcast %cst_42 : f32 to vector<16x64xf32>
    %94 = arith.mulf %93, %92 : vector<16x64xf32>
    %95 = vector.extract_strided_slice %86 {offsets = [0, 64], sizes = [16, 64], strides = [1, 1]} : vector<16x256xf32> to vector<16x64xf32>
    %cst_43 = arith.constant 5.000000e-01 : f32
    %96 = vector.broadcast %cst_43 : f32 to vector<16x64xf32>
    %97 = arith.mulf %96, %95 : vector<16x64xf32>
    %98 = math.tanh %97 : vector<16x64xf32>
    %cst_44 = arith.constant 1.000000e+00 : f32
    %99 = vector.broadcast %cst_44 : f32 to vector<16x64xf32>
    %100 = arith.addf %98, %99 : vector<16x64xf32>
    %cst_45 = arith.constant 5.000000e-01 : f32
    %101 = vector.broadcast %cst_45 : f32 to vector<16x64xf32>
    %102 = arith.mulf %101, %100 : vector<16x64xf32>
    %103 = vector.extract_strided_slice %86 {offsets = [0, 128], sizes = [16, 64], strides = [1, 1]} : vector<16x256xf32> to vector<16x64xf32>
    %104 = math.tanh %103 : vector<16x64xf32>
    %105 = vector.extract_strided_slice %86 {offsets = [0, 192], sizes = [16, 64], strides = [1, 1]} : vector<16x256xf32> to vector<16x64xf32>
    %cst_46 = arith.constant 5.000000e-01 : f32
    %106 = vector.broadcast %cst_46 : f32 to vector<16x64xf32>
    %107 = arith.mulf %106, %105 : vector<16x64xf32>
    %108 = math.tanh %107 : vector<16x64xf32>
    %cst_47 = arith.constant 1.000000e+00 : f32
    %109 = vector.broadcast %cst_47 : f32 to vector<16x64xf32>
    %110 = arith.addf %108, %109 : vector<16x64xf32>
    %cst_48 = arith.constant 5.000000e-01 : f32
    %111 = vector.broadcast %cst_48 : f32 to vector<16x64xf32>
    %112 = arith.mulf %111, %110 : vector<16x64xf32>
    %113 = arith.mulf %102, %77 : vector<16x64xf32>
    %114 = arith.mulf %94, %104 : vector<16x64xf32>
    %115 = arith.addf %113, %114 : vector<16x64xf32>
    %116 = math.tanh %115 : vector<16x64xf32>
    %117 = arith.mulf %112, %116 : vector<16x64xf32>
    %c2 = arith.constant 2 : index
    %c0_49 = arith.constant 0 : index
    %c0_50 = arith.constant 0 : index
    %118 = vector.load %arg11[%c2, %c0_49, %c0_50] : memref<8x16x64xf32, #tpu.memory_space<vmem>>, vector<1x16x64xf32>
    %119 = vector.shape_cast %118 : vector<1x16x64xf32> to vector<16x64xf32>
    %120 = vector.shape_cast %117 : vector<16x64xf32> to vector<1x16x64xf32>
    tpu.vector_store %arg11[%c2, %c0_49, %c0_50], %120 {strides = array<i32>} : memref<8x16x64xf32, #tpu.memory_space<vmem>>, vector<1x16x64xf32>,
    %121 = arith.truncf %117 : vector<16x64xf32> to vector<16x64xbf16>
    %cst_51 = arith.constant dense<0.000000e+00> : vector<16x256xf32>
    %122 = tpu.matmul %121, %8, %cst_51 {dimension_numbers = #tpu.dot_dimension_numbers<[1], [0], [0], [1], [0, 0, 1, 1], [], []>} : vector<16x64xbf16>, vector<64x256xbf16>, vector<16x256xf32> -> vector<16x256xf32>
    %c48 = arith.constant 48 : index
    %c0_52 = arith.constant 0 : index
    %123 = vector.load %arg10[%c48, %c0_52] : memref<128x256xf32, #tpu.memory_space<vmem>>, vector<16x256xf32>
    %124 = arith.addf %122, %123 : vector<16x256xf32>
    %125 = vector.extract_strided_slice %124 {offsets = [0, 0], sizes = [16, 64], strides = [1, 1]} : vector<16x256xf32> to vector<16x64xf32>
    %cst_53 = arith.constant 5.000000e-01 : f32
    %126 = vector.broadcast %cst_53 : f32 to vector<16x64xf32>
    %127 = arith.mulf %126, %125 : vector<16x64xf32>
    %128 = math.tanh %127 : vector<16x64xf32>
    %cst_54 = arith.constant 1.000000e+00 : f32
    %129 = vector.broadcast %cst_54 : f32 to vector<16x64xf32>
    %130 = arith.addf %128, %129 : vector<16x64xf32>
    %cst_55 = arith.constant 5.000000e-01 : f32
    %131 = vector.broadcast %cst_55 : f32 to vector<16x64xf32>
    %132 = arith.mulf %131, %130 : vector<16x64xf32>
    %133 = vector.extract_strided_slice %124 {offsets = [0, 64], sizes = [16, 64], strides = [1, 1]} : vector<16x256xf32> to vector<16x64xf32>
    %cst_56 = arith.constant 5.000000e-01 : f32
    %134 = vector.broadcast %cst_56 : f32 to vector<16x64xf32>
    %135 = arith.mulf %134, %133 : vector<16x64xf32>
    %136 = math.tanh %135 : vector<16x64xf32>
    %cst_57 = arith.constant 1.000000e+00 : f32
    %137 = vector.broadcast %cst_57 : f32 to vector<16x64xf32>
    %138 = arith.addf %136, %137 : vector<16x64xf32>
    %cst_58 = arith.constant 5.000000e-01 : f32
    %139 = vector.broadcast %cst_58 : f32 to vector<16x64xf32>
    %140 = arith.mulf %139, %138 : vector<16x64xf32>
    %141 = vector.extract_strided_slice %124 {offsets = [0, 128], sizes = [16, 64], strides = [1, 1]} : vector<16x256xf32> to vector<16x64xf32>
    %142 = math.tanh %141 : vector<16x64xf32>
    %143 = vector.extract_strided_slice %124 {offsets = [0, 192], sizes = [16, 64], strides = [1, 1]} : vector<16x256xf32> to vector<16x64xf32>
    %cst_59 = arith.constant 5.000000e-01 : f32
    %144 = vector.broadcast %cst_59 : f32 to vector<16x64xf32>
    %145 = arith.mulf %144, %143 : vector<16x64xf32>
    %146 = math.tanh %145 : vector<16x64xf32>
    %cst_60 = arith.constant 1.000000e+00 : f32
    %147 = vector.broadcast %cst_60 : f32 to vector<16x64xf32>
    %148 = arith.addf %146, %147 : vector<16x64xf32>
    %cst_61 = arith.constant 5.000000e-01 : f32
    %149 = vector.broadcast %cst_61 : f32 to vector<16x64xf32>
    %150 = arith.mulf %149, %148 : vector<16x64xf32>
    %151 = arith.mulf %140, %115 : vector<16x64xf32>
    %152 = arith.mulf %132, %142 : vector<16x64xf32>
    %153 = arith.addf %151, %152 : vector<16x64xf32>
    %154 = math.tanh %153 : vector<16x64xf32>
    %155 = arith.mulf %150, %154 : vector<16x64xf32>
    %c3 = arith.constant 3 : index
    %c0_62 = arith.constant 0 : index
    %c0_63 = arith.constant 0 : index
    %156 = vector.load %arg11[%c3, %c0_62, %c0_63] : memref<8x16x64xf32, #tpu.memory_space<vmem>>, vector<1x16x64xf32>
    %157 = vector.shape_cast %156 : vector<1x16x64xf32> to vector<16x64xf32>
    %158 = vector.shape_cast %155 : vector<16x64xf32> to vector<1x16x64xf32>
    tpu.vector_store %arg11[%c3, %c0_62, %c0_63], %158 {strides = array<i32>} : memref<8x16x64xf32, #tpu.memory_space<vmem>>, vector<1x16x64xf32>,
    %159 = arith.truncf %155 : vector<16x64xf32> to vector<16x64xbf16>
    %cst_64 = arith.constant dense<0.000000e+00> : vector<16x256xf32>
    %160 = tpu.matmul %159, %8, %cst_64 {dimension_numbers = #tpu.dot_dimension_numbers<[1], [0], [0], [1], [0, 0, 1, 1], [], []>} : vector<16x64xbf16>, vector<64x256xbf16>, vector<16x256xf32> -> vector<16x256xf32>
    %c64 = arith.constant 64 : index
    %c0_65 = arith.constant 0 : index
    %161 = vector.load %arg10[%c64, %c0_65] : memref<128x256xf32, #tpu.memory_space<vmem>>, vector<16x256xf32>
    %162 = arith.addf %160, %161 : vector<16x256xf32>
    %163 = vector.extract_strided_slice %162 {offsets = [0, 0], sizes = [16, 64], strides = [1, 1]} : vector<16x256xf32> to vector<16x64xf32>
    %cst_66 = arith.constant 5.000000e-01 : f32
    %164 = vector.broadcast %cst_66 : f32 to vector<16x64xf32>
    %165 = arith.mulf %164, %163 : vector<16x64xf32>
    %166 = math.tanh %165 : vector<16x64xf32>
    %cst_67 = arith.constant 1.000000e+00 : f32
    %167 = vector.broadcast %cst_67 : f32 to vector<16x64xf32>
    %168 = arith.addf %166, %167 : vector<16x64xf32>
    %cst_68 = arith.constant 5.000000e-01 : f32
    %169 = vector.broadcast %cst_68 : f32 to vector<16x64xf32>
    %170 = arith.mulf %169, %168 : vector<16x64xf32>
    %171 = vector.extract_strided_slice %162 {offsets = [0, 64], sizes = [16, 64], strides = [1, 1]} : vector<16x256xf32> to vector<16x64xf32>
    %cst_69 = arith.constant 5.000000e-01 : f32
    %172 = vector.broadcast %cst_69 : f32 to vector<16x64xf32>
    %173 = arith.mulf %172, %171 : vector<16x64xf32>
    %174 = math.tanh %173 : vector<16x64xf32>
    %cst_70 = arith.constant 1.000000e+00 : f32
    %175 = vector.broadcast %cst_70 : f32 to vector<16x64xf32>
    %176 = arith.addf %174, %175 : vector<16x64xf32>
    %cst_71 = arith.constant 5.000000e-01 : f32
    %177 = vector.broadcast %cst_71 : f32 to vector<16x64xf32>
    %178 = arith.mulf %177, %176 : vector<16x64xf32>
    %179 = vector.extract_strided_slice %162 {offsets = [0, 128], sizes = [16, 64], strides = [1, 1]} : vector<16x256xf32> to vector<16x64xf32>
    %180 = math.tanh %179 : vector<16x64xf32>
    %181 = vector.extract_strided_slice %162 {offsets = [0, 192], sizes = [16, 64], strides = [1, 1]} : vector<16x256xf32> to vector<16x64xf32>
    %cst_72 = arith.constant 5.000000e-01 : f32
    %182 = vector.broadcast %cst_72 : f32 to vector<16x64xf32>
    %183 = arith.mulf %182, %181 : vector<16x64xf32>
    %184 = math.tanh %183 : vector<16x64xf32>
    %cst_73 = arith.constant 1.000000e+00 : f32
    %185 = vector.broadcast %cst_73 : f32 to vector<16x64xf32>
    %186 = arith.addf %184, %185 : vector<16x64xf32>
    %cst_74 = arith.constant 5.000000e-01 : f32
    %187 = vector.broadcast %cst_74 : f32 to vector<16x64xf32>
    %188 = arith.mulf %187, %186 : vector<16x64xf32>
    %189 = arith.mulf %178, %153 : vector<16x64xf32>
    %190 = arith.mulf %170, %180 : vector<16x64xf32>
    %191 = arith.addf %189, %190 : vector<16x64xf32>
    %192 = math.tanh %191 : vector<16x64xf32>
    %193 = arith.mulf %188, %192 : vector<16x64xf32>
    %c4 = arith.constant 4 : index
    %c0_75 = arith.constant 0 : index
    %c0_76 = arith.constant 0 : index
    %194 = vector.load %arg11[%c4, %c0_75, %c0_76] : memref<8x16x64xf32, #tpu.memory_space<vmem>>, vector<1x16x64xf32>
    %195 = vector.shape_cast %194 : vector<1x16x64xf32> to vector<16x64xf32>
    %196 = vector.shape_cast %193 : vector<16x64xf32> to vector<1x16x64xf32>
    tpu.vector_store %arg11[%c4, %c0_75, %c0_76], %196 {strides = array<i32>} : memref<8x16x64xf32, #tpu.memory_space<vmem>>, vector<1x16x64xf32>,
    %197 = arith.truncf %193 : vector<16x64xf32> to vector<16x64xbf16>
    %cst_77 = arith.constant dense<0.000000e+00> : vector<16x256xf32>
    %198 = tpu.matmul %197, %8, %cst_77 {dimension_numbers = #tpu.dot_dimension_numbers<[1], [0], [0], [1], [0, 0, 1, 1], [], []>} : vector<16x64xbf16>, vector<64x256xbf16>, vector<16x256xf32> -> vector<16x256xf32>
    %c80 = arith.constant 80 : index
    %c0_78 = arith.constant 0 : index
    %199 = vector.load %arg10[%c80, %c0_78] : memref<128x256xf32, #tpu.memory_space<vmem>>, vector<16x256xf32>
    %200 = arith.addf %198, %199 : vector<16x256xf32>
    %201 = vector.extract_strided_slice %200 {offsets = [0, 0], sizes = [16, 64], strides = [1, 1]} : vector<16x256xf32> to vector<16x64xf32>
    %cst_79 = arith.constant 5.000000e-01 : f32
    %202 = vector.broadcast %cst_79 : f32 to vector<16x64xf32>
    %203 = arith.mulf %202, %201 : vector<16x64xf32>
    %204 = math.tanh %203 : vector<16x64xf32>
    %cst_80 = arith.constant 1.000000e+00 : f32
    %205 = vector.broadcast %cst_80 : f32 to vector<16x64xf32>
    %206 = arith.addf %204, %205 : vector<16x64xf32>
    %cst_81 = arith.constant 5.000000e-01 : f32
    %207 = vector.broadcast %cst_81 : f32 to vector<16x64xf32>
    %208 = arith.mulf %207, %206 : vector<16x64xf32>
    %209 = vector.extract_strided_slice %200 {offsets = [0, 64], sizes = [16, 64], strides = [1, 1]} : vector<16x256xf32> to vector<16x64xf32>
    %cst_82 = arith.constant 5.000000e-01 : f32
    %210 = vector.broadcast %cst_82 : f32 to vector<16x64xf32>
    %211 = arith.mulf %210, %209 : vector<16x64xf32>
    %212 = math.tanh %211 : vector<16x64xf32>
    %cst_83 = arith.constant 1.000000e+00 : f32
    %213 = vector.broadcast %cst_83 : f32 to vector<16x64xf32>
    %214 = arith.addf %212, %213 : vector<16x64xf32>
    %cst_84 = arith.constant 5.000000e-01 : f32
    %215 = vector.broadcast %cst_84 : f32 to vector<16x64xf32>
    %216 = arith.mulf %215, %214 : vector<16x64xf32>
    %217 = vector.extract_strided_slice %200 {offsets = [0, 128], sizes = [16, 64], strides = [1, 1]} : vector<16x256xf32> to vector<16x64xf32>
    %218 = math.tanh %217 : vector<16x64xf32>
    %219 = vector.extract_strided_slice %200 {offsets = [0, 192], sizes = [16, 64], strides = [1, 1]} : vector<16x256xf32> to vector<16x64xf32>
    %cst_85 = arith.constant 5.000000e-01 : f32
    %220 = vector.broadcast %cst_85 : f32 to vector<16x64xf32>
    %221 = arith.mulf %220, %219 : vector<16x64xf32>
    %222 = math.tanh %221 : vector<16x64xf32>
    %cst_86 = arith.constant 1.000000e+00 : f32
    %223 = vector.broadcast %cst_86 : f32 to vector<16x64xf32>
    %224 = arith.addf %222, %223 : vector<16x64xf32>
    %cst_87 = arith.constant 5.000000e-01 : f32
    %225 = vector.broadcast %cst_87 : f32 to vector<16x64xf32>
    %226 = arith.mulf %225, %224 : vector<16x64xf32>
    %227 = arith.mulf %216, %191 : vector<16x64xf32>
    %228 = arith.mulf %208, %218 : vector<16x64xf32>
    %229 = arith.addf %227, %228 : vector<16x64xf32>
    %230 = math.tanh %229 : vector<16x64xf32>
    %231 = arith.mulf %226, %230 : vector<16x64xf32>
    %c5 = arith.constant 5 : index
    %c0_88 = arith.constant 0 : index
    %c0_89 = arith.constant 0 : index
    %232 = vector.load %arg11[%c5, %c0_88, %c0_89] : memref<8x16x64xf32, #tpu.memory_space<vmem>>, vector<1x16x64xf32>
    %233 = vector.shape_cast %232 : vector<1x16x64xf32> to vector<16x64xf32>
    %234 = vector.shape_cast %231 : vector<16x64xf32> to vector<1x16x64xf32>
    tpu.vector_store %arg11[%c5, %c0_88, %c0_89], %234 {strides = array<i32>} : memref<8x16x64xf32, #tpu.memory_space<vmem>>, vector<1x16x64xf32>,
    %235 = arith.truncf %231 : vector<16x64xf32> to vector<16x64xbf16>
    %cst_90 = arith.constant dense<0.000000e+00> : vector<16x256xf32>
    %236 = tpu.matmul %235, %8, %cst_90 {dimension_numbers = #tpu.dot_dimension_numbers<[1], [0], [0], [1], [0, 0, 1, 1], [], []>} : vector<16x64xbf16>, vector<64x256xbf16>, vector<16x256xf32> -> vector<16x256xf32>
    %c96 = arith.constant 96 : index
    %c0_91 = arith.constant 0 : index
    %237 = vector.load %arg10[%c96, %c0_91] : memref<128x256xf32, #tpu.memory_space<vmem>>, vector<16x256xf32>
    %238 = arith.addf %236, %237 : vector<16x256xf32>
    %239 = vector.extract_strided_slice %238 {offsets = [0, 0], sizes = [16, 64], strides = [1, 1]} : vector<16x256xf32> to vector<16x64xf32>
    %cst_92 = arith.constant 5.000000e-01 : f32
    %240 = vector.broadcast %cst_92 : f32 to vector<16x64xf32>
    %241 = arith.mulf %240, %239 : vector<16x64xf32>
    %242 = math.tanh %241 : vector<16x64xf32>
    %cst_93 = arith.constant 1.000000e+00 : f32
    %243 = vector.broadcast %cst_93 : f32 to vector<16x64xf32>
    %244 = arith.addf %242, %243 : vector<16x64xf32>
    %cst_94 = arith.constant 5.000000e-01 : f32
    %245 = vector.broadcast %cst_94 : f32 to vector<16x64xf32>
    %246 = arith.mulf %245, %244 : vector<16x64xf32>
    %247 = vector.extract_strided_slice %238 {offsets = [0, 64], sizes = [16, 64], strides = [1, 1]} : vector<16x256xf32> to vector<16x64xf32>
    %cst_95 = arith.constant 5.000000e-01 : f32
    %248 = vector.broadcast %cst_95 : f32 to vector<16x64xf32>
    %249 = arith.mulf %248, %247 : vector<16x64xf32>
    %250 = math.tanh %249 : vector<16x64xf32>
    %cst_96 = arith.constant 1.000000e+00 : f32
    %251 = vector.broadcast %cst_96 : f32 to vector<16x64xf32>
    %252 = arith.addf %250, %251 : vector<16x64xf32>
    %cst_97 = arith.constant 5.000000e-01 : f32
    %253 = vector.broadcast %cst_97 : f32 to vector<16x64xf32>
    %254 = arith.mulf %253, %252 : vector<16x64xf32>
    %255 = vector.extract_strided_slice %238 {offsets = [0, 128], sizes = [16, 64], strides = [1, 1]} : vector<16x256xf32> to vector<16x64xf32>
    %256 = math.tanh %255 : vector<16x64xf32>
    %257 = vector.extract_strided_slice %238 {offsets = [0, 192], sizes = [16, 64], strides = [1, 1]} : vector<16x256xf32> to vector<16x64xf32>
    %cst_98 = arith.constant 5.000000e-01 : f32
    %258 = vector.broadcast %cst_98 : f32 to vector<16x64xf32>
    %259 = arith.mulf %258, %257 : vector<16x64xf32>
    %260 = math.tanh %259 : vector<16x64xf32>
    %cst_99 = arith.constant 1.000000e+00 : f32
    %261 = vector.broadcast %cst_99 : f32 to vector<16x64xf32>
    %262 = arith.addf %260, %261 : vector<16x64xf32>
    %cst_100 = arith.constant 5.000000e-01 : f32
    %263 = vector.broadcast %cst_100 : f32 to vector<16x64xf32>
    %264 = arith.mulf %263, %262 : vector<16x64xf32>
    %265 = arith.mulf %254, %229 : vector<16x64xf32>
    %266 = arith.mulf %246, %256 : vector<16x64xf32>
    %267 = arith.addf %265, %266 : vector<16x64xf32>
    %268 = math.tanh %267 : vector<16x64xf32>
    %269 = arith.mulf %264, %268 : vector<16x64xf32>
    %c6 = arith.constant 6 : index
    %c0_101 = arith.constant 0 : index
    %c0_102 = arith.constant 0 : index
    %270 = vector.load %arg11[%c6, %c0_101, %c0_102] : memref<8x16x64xf32, #tpu.memory_space<vmem>>, vector<1x16x64xf32>
    %271 = vector.shape_cast %270 : vector<1x16x64xf32> to vector<16x64xf32>
    %272 = vector.shape_cast %269 : vector<16x64xf32> to vector<1x16x64xf32>
    tpu.vector_store %arg11[%c6, %c0_101, %c0_102], %272 {strides = array<i32>} : memref<8x16x64xf32, #tpu.memory_space<vmem>>, vector<1x16x64xf32>,
    %273 = arith.truncf %269 : vector<16x64xf32> to vector<16x64xbf16>
    %cst_103 = arith.constant dense<0.000000e+00> : vector<16x256xf32>
    %274 = tpu.matmul %273, %8, %cst_103 {dimension_numbers = #tpu.dot_dimension_numbers<[1], [0], [0], [1], [0, 0, 1, 1], [], []>} : vector<16x64xbf16>, vector<64x256xbf16>, vector<16x256xf32> -> vector<16x256xf32>
    %c112 = arith.constant 112 : index
    %c0_104 = arith.constant 0 : index
    %275 = vector.load %arg10[%c112, %c0_104] : memref<128x256xf32, #tpu.memory_space<vmem>>, vector<16x256xf32>
    %276 = arith.addf %274, %275 : vector<16x256xf32>
    %277 = vector.extract_strided_slice %276 {offsets = [0, 0], sizes = [16, 64], strides = [1, 1]} : vector<16x256xf32> to vector<16x64xf32>
    %cst_105 = arith.constant 5.000000e-01 : f32
    %278 = vector.broadcast %cst_105 : f32 to vector<16x64xf32>
    %279 = arith.mulf %278, %277 : vector<16x64xf32>
    %280 = math.tanh %279 : vector<16x64xf32>
    %cst_106 = arith.constant 1.000000e+00 : f32
    %281 = vector.broadcast %cst_106 : f32 to vector<16x64xf32>
    %282 = arith.addf %280, %281 : vector<16x64xf32>
    %cst_107 = arith.constant 5.000000e-01 : f32
    %283 = vector.broadcast %cst_107 : f32 to vector<16x64xf32>
    %284 = arith.mulf %283, %282 : vector<16x64xf32>
    %285 = vector.extract_strided_slice %276 {offsets = [0, 64], sizes = [16, 64], strides = [1, 1]} : vector<16x256xf32> to vector<16x64xf32>
    %cst_108 = arith.constant 5.000000e-01 : f32
    %286 = vector.broadcast %cst_108 : f32 to vector<16x64xf32>
    %287 = arith.mulf %286, %285 : vector<16x64xf32>
    %288 = math.tanh %287 : vector<16x64xf32>
    %cst_109 = arith.constant 1.000000e+00 : f32
    %289 = vector.broadcast %cst_109 : f32 to vector<16x64xf32>
    %290 = arith.addf %288, %289 : vector<16x64xf32>
    %cst_110 = arith.constant 5.000000e-01 : f32
    %291 = vector.broadcast %cst_110 : f32 to vector<16x64xf32>
    %292 = arith.mulf %291, %290 : vector<16x64xf32>
    %293 = vector.extract_strided_slice %276 {offsets = [0, 128], sizes = [16, 64], strides = [1, 1]} : vector<16x256xf32> to vector<16x64xf32>
    %294 = math.tanh %293 : vector<16x64xf32>
    %295 = vector.extract_strided_slice %276 {offsets = [0, 192], sizes = [16, 64], strides = [1, 1]} : vector<16x256xf32> to vector<16x64xf32>
    %cst_111 = arith.constant 5.000000e-01 : f32
    %296 = vector.broadcast %cst_111 : f32 to vector<16x64xf32>
    %297 = arith.mulf %296, %295 : vector<16x64xf32>
    %298 = math.tanh %297 : vector<16x64xf32>
    %cst_112 = arith.constant 1.000000e+00 : f32
    %299 = vector.broadcast %cst_112 : f32 to vector<16x64xf32>
    %300 = arith.addf %298, %299 : vector<16x64xf32>
    %cst_113 = arith.constant 5.000000e-01 : f32
    %301 = vector.broadcast %cst_113 : f32 to vector<16x64xf32>
    %302 = arith.mulf %301, %300 : vector<16x64xf32>
    %303 = arith.mulf %292, %267 : vector<16x64xf32>
    %304 = arith.mulf %284, %294 : vector<16x64xf32>
    %305 = arith.addf %303, %304 : vector<16x64xf32>
    %306 = math.tanh %305 : vector<16x64xf32>
    %307 = arith.mulf %302, %306 : vector<16x64xf32>
    %c7 = arith.constant 7 : index
    %c0_114 = arith.constant 0 : index
    %c0_115 = arith.constant 0 : index
    %308 = vector.load %arg11[%c7, %c0_114, %c0_115] : memref<8x16x64xf32, #tpu.memory_space<vmem>>, vector<1x16x64xf32>
    %309 = vector.shape_cast %308 : vector<1x16x64xf32> to vector<16x64xf32>
    %310 = vector.shape_cast %307 : vector<16x64xf32> to vector<1x16x64xf32>
    tpu.vector_store %arg11[%c7, %c0_114, %c0_115], %310 {strides = array<i32>} : memref<8x16x64xf32, #tpu.memory_space<vmem>>, vector<1x16x64xf32>,
    %c0_116 = arith.constant 0 : index
    %c0_117 = arith.constant 0 : index
    %311 = vector.load %arg5[%c0_116, %c0_117] : memref<1x32xf32, #tpu.memory_space<vmem>>, vector<1x32xf32>
    %cst_118 = arith.constant 0xFF800000 : f32
    %312 = vector.broadcast %cst_118 : f32 to vector<16x1xf32>
    %cst_119 = arith.constant 0.000000e+00 : f32
    %313 = vector.broadcast %cst_119 : f32 to vector<16x1xf32>
    %cst_120 = arith.constant 0.000000e+00 : f32
    %314 = vector.broadcast %cst_120 : f32 to vector<16x32xf32>
    %c0_121 = arith.constant 0 : index
    %c0_122 = arith.constant 0 : index
    %c0_123 = arith.constant 0 : index
    %315 = vector.load %arg11[%c0_121, %c0_122, %c0_123] : memref<8x16x64xf32, #tpu.memory_space<vmem>>, vector<1x16x64xf32>
    %316 = vector.shape_cast %315 : vector<1x16x64xf32> to vector<16x64xf32>
    %317 = vector.extract_strided_slice %316 {offsets = [0, 0], sizes = [16, 32], strides = [1, 1]} : vector<16x64xf32> to vector<16x32xf32>
    %c7_124 = arith.constant 7 : index
    %c0_125 = arith.constant 0 : index
    %c0_126 = arith.constant 0 : index
    %318 = vector.load %arg11[%c7_124, %c0_125, %c0_126] : memref<8x16x64xf32, #tpu.memory_space<vmem>>, vector<1x16x64xf32>
    %319 = vector.shape_cast %318 : vector<1x16x64xf32> to vector<16x64xf32>
    %320 = vector.extract_strided_slice %319 {offsets = [0, 32], sizes = [16, 32], strides = [1, 1]} : vector<16x64xf32> to vector<16x32xf32>
    %321 = arith.addf %317, %320 : vector<16x32xf32>
    %322 = math.tanh %321 : vector<16x32xf32>
    %323 = vector.broadcast %311 : vector<1x32xf32> to vector<16x32xf32>
    %324 = arith.mulf %322, %323 : vector<16x32xf32>
    %cst_127 = arith.constant dense<0.000000e+00> : vector<16xf32>
    %325 = vector.multi_reduction <add>, %324, %cst_127 [1] : vector<16x32xf32> to vector<16xf32>
    %326 = vector.shape_cast %325 : vector<16xf32> to vector<16x1xf32>
    %327 = arith.maximumf %312, %326 : vector<16x1xf32>
    %328 = arith.subf %312, %327 : vector<16x1xf32>
    %329 = math.exp %328 : vector<16x1xf32>
    %330 = arith.subf %326, %327 : vector<16x1xf32>
    %331 = math.exp %330 : vector<16x1xf32>
    %332 = arith.mulf %329, %313 : vector<16x1xf32>
    %333 = arith.addf %332, %331 : vector<16x1xf32>
    %334 = vector.broadcast %329 : vector<16x1xf32> to vector<16x32xf32>
    %335 = arith.mulf %334, %314 : vector<16x32xf32>
    %336 = vector.broadcast %331 : vector<16x1xf32> to vector<16x32xf32>
    %337 = arith.mulf %336, %321 : vector<16x32xf32>
    %338 = arith.addf %335, %337 : vector<16x32xf32>
    %c1_128 = arith.constant 1 : index
    %c0_129 = arith.constant 0 : index
    %c0_130 = arith.constant 0 : index
    %339 = vector.load %arg11[%c1_128, %c0_129, %c0_130] : memref<8x16x64xf32, #tpu.memory_space<vmem>>, vector<1x16x64xf32>
    %340 = vector.shape_cast %339 : vector<1x16x64xf32> to vector<16x64xf32>
    %341 = vector.extract_strided_slice %340 {offsets = [0, 0], sizes = [16, 32], strides = [1, 1]} : vector<16x64xf32> to vector<16x32xf32>
    %c6_131 = arith.constant 6 : index
    %c0_132 = arith.constant 0 : index
    %c0_133 = arith.constant 0 : index
    %342 = vector.load %arg11[%c6_131, %c0_132, %c0_133] : memref<8x16x64xf32, #tpu.memory_space<vmem>>, vector<1x16x64xf32>
    %343 = vector.shape_cast %342 : vector<1x16x64xf32> to vector<16x64xf32>
    %344 = vector.extract_strided_slice %343 {offsets = [0, 32], sizes = [16, 32], strides = [1, 1]} : vector<16x64xf32> to vector<16x32xf32>
    %345 = arith.addf %341, %344 : vector<16x32xf32>
    %346 = math.tanh %345 : vector<16x32xf32>
    %347 = vector.broadcast %311 : vector<1x32xf32> to vector<16x32xf32>
    %348 = arith.mulf %346, %347 : vector<16x32xf32>
    %cst_134 = arith.constant dense<0.000000e+00> : vector<16xf32>
    %349 = vector.multi_reduction <add>, %348, %cst_134 [1] : vector<16x32xf32> to vector<16xf32>
    %350 = vector.shape_cast %349 : vector<16xf32> to vector<16x1xf32>
    %351 = arith.maximumf %327, %350 : vector<16x1xf32>
    %352 = arith.subf %327, %351 : vector<16x1xf32>
    %353 = math.exp %352 : vector<16x1xf32>
    %354 = arith.subf %350, %351 : vector<16x1xf32>
    %355 = math.exp %354 : vector<16x1xf32>
    %356 = arith.mulf %353, %333 : vector<16x1xf32>
    %357 = arith.addf %356, %355 : vector<16x1xf32>
    %358 = vector.broadcast %353 : vector<16x1xf32> to vector<16x32xf32>
    %359 = arith.mulf %358, %338 : vector<16x32xf32>
    %360 = vector.broadcast %355 : vector<16x1xf32> to vector<16x32xf32>
    %361 = arith.mulf %360, %345 : vector<16x32xf32>
    %362 = arith.addf %359, %361 : vector<16x32xf32>
    %c2_135 = arith.constant 2 : index
    %c0_136 = arith.constant 0 : index
    %c0_137 = arith.constant 0 : index
    %363 = vector.load %arg11[%c2_135, %c0_136, %c0_137] : memref<8x16x64xf32, #tpu.memory_space<vmem>>, vector<1x16x64xf32>
    %364 = vector.shape_cast %363 : vector<1x16x64xf32> to vector<16x64xf32>
    %365 = vector.extract_strided_slice %364 {offsets = [0, 0], sizes = [16, 32], strides = [1, 1]} : vector<16x64xf32> to vector<16x32xf32>
    %c5_138 = arith.constant 5 : index
    %c0_139 = arith.constant 0 : index
    %c0_140 = arith.constant 0 : index
    %366 = vector.load %arg11[%c5_138, %c0_139, %c0_140] : memref<8x16x64xf32, #tpu.memory_space<vmem>>, vector<1x16x64xf32>
    %367 = vector.shape_cast %366 : vector<1x16x64xf32> to vector<16x64xf32>
    %368 = vector.extract_strided_slice %367 {offsets = [0, 32], sizes = [16, 32], strides = [1, 1]} : vector<16x64xf32> to vector<16x32xf32>
    %369 = arith.addf %365, %368 : vector<16x32xf32>
    %370 = math.tanh %369 : vector<16x32xf32>
    %371 = vector.broadcast %311 : vector<1x32xf32> to vector<16x32xf32>
    %372 = arith.mulf %370, %371 : vector<16x32xf32>
    %cst_141 = arith.constant dense<0.000000e+00> : vector<16xf32>
    %373 = vector.multi_reduction <add>, %372, %cst_141 [1] : vector<16x32xf32> to vector<16xf32>
    %374 = vector.shape_cast %373 : vector<16xf32> to vector<16x1xf32>
    %375 = arith.maximumf %351, %374 : vector<16x1xf32>
    %376 = arith.subf %351, %375 : vector<16x1xf32>
    %377 = math.exp %376 : vector<16x1xf32>
    %378 = arith.subf %374, %375 : vector<16x1xf32>
    %379 = math.exp %378 : vector<16x1xf32>
    %380 = arith.mulf %377, %357 : vector<16x1xf32>
    %381 = arith.addf %380, %379 : vector<16x1xf32>
    %382 = vector.broadcast %377 : vector<16x1xf32> to vector<16x32xf32>
    %383 = arith.mulf %382, %362 : vector<16x32xf32>
    %384 = vector.broadcast %379 : vector<16x1xf32> to vector<16x32xf32>
    %385 = arith.mulf %384, %369 : vector<16x32xf32>
    %386 = arith.addf %383, %385 : vector<16x32xf32>
    %c3_142 = arith.constant 3 : index
    %c0_143 = arith.constant 0 : index
    %c0_144 = arith.constant 0 : index
    %387 = vector.load %arg11[%c3_142, %c0_143, %c0_144] : memref<8x16x64xf32, #tpu.memory_space<vmem>>, vector<1x16x64xf32>
    %388 = vector.shape_cast %387 : vector<1x16x64xf32> to vector<16x64xf32>
    %389 = vector.extract_strided_slice %388 {offsets = [0, 0], sizes = [16, 32], strides = [1, 1]} : vector<16x64xf32> to vector<16x32xf32>
    %c4_145 = arith.constant 4 : index
    %c0_146 = arith.constant 0 : index
    %c0_147 = arith.constant 0 : index
    %390 = vector.load %arg11[%c4_145, %c0_146, %c0_147] : memref<8x16x64xf32, #tpu.memory_space<vmem>>, vector<1x16x64xf32>
    %391 = vector.shape_cast %390 : vector<1x16x64xf32> to vector<16x64xf32>
    %392 = vector.extract_strided_slice %391 {offsets = [0, 32], sizes = [16, 32], strides = [1, 1]} : vector<16x64xf32> to vector<16x32xf32>
    %393 = arith.addf %389, %392 : vector<16x32xf32>
    %394 = math.tanh %393 : vector<16x32xf32>
    %395 = vector.broadcast %311 : vector<1x32xf32> to vector<16x32xf32>
    %396 = arith.mulf %394, %395 : vector<16x32xf32>
    %cst_148 = arith.constant dense<0.000000e+00> : vector<16xf32>
    %397 = vector.multi_reduction <add>, %396, %cst_148 [1] : vector<16x32xf32> to vector<16xf32>
    %398 = vector.shape_cast %397 : vector<16xf32> to vector<16x1xf32>
    %399 = arith.maximumf %375, %398 : vector<16x1xf32>
    %400 = arith.subf %375, %399 : vector<16x1xf32>
    %401 = math.exp %400 : vector<16x1xf32>
    %402 = arith.subf %398, %399 : vector<16x1xf32>
    %403 = math.exp %402 : vector<16x1xf32>
    %404 = arith.mulf %401, %381 : vector<16x1xf32>
    %405 = arith.addf %404, %403 : vector<16x1xf32>
    %406 = vector.broadcast %401 : vector<16x1xf32> to vector<16x32xf32>
    %407 = arith.mulf %406, %386 : vector<16x32xf32>
    %408 = vector.broadcast %403 : vector<16x1xf32> to vector<16x32xf32>
    %409 = arith.mulf %408, %393 : vector<16x32xf32>
    %410 = arith.addf %407, %409 : vector<16x32xf32>
    %c4_149 = arith.constant 4 : index
    %c0_150 = arith.constant 0 : index
    %c0_151 = arith.constant 0 : index
    %411 = vector.load %arg11[%c4_149, %c0_150, %c0_151] : memref<8x16x64xf32, #tpu.memory_space<vmem>>, vector<1x16x64xf32>
    %412 = vector.shape_cast %411 : vector<1x16x64xf32> to vector<16x64xf32>
    %413 = vector.extract_strided_slice %412 {offsets = [0, 0], sizes = [16, 32], strides = [1, 1]} : vector<16x64xf32> to vector<16x32xf32>
    %c3_152 = arith.constant 3 : index
    %c0_153 = arith.constant 0 : index
    %c0_154 = arith.constant 0 : index
    %414 = vector.load %arg11[%c3_152, %c0_153, %c0_154] : memref<8x16x64xf32, #tpu.memory_space<vmem>>, vector<1x16x64xf32>
    %415 = vector.shape_cast %414 : vector<1x16x64xf32> to vector<16x64xf32>
    %416 = vector.extract_strided_slice %415 {offsets = [0, 32], sizes = [16, 32], strides = [1, 1]} : vector<16x64xf32> to vector<16x32xf32>
    %417 = arith.addf %413, %416 : vector<16x32xf32>
    %418 = math.tanh %417 : vector<16x32xf32>
    %419 = vector.broadcast %311 : vector<1x32xf32> to vector<16x32xf32>
    %420 = arith.mulf %418, %419 : vector<16x32xf32>
    %cst_155 = arith.constant dense<0.000000e+00> : vector<16xf32>
    %421 = vector.multi_reduction <add>, %420, %cst_155 [1] : vector<16x32xf32> to vector<16xf32>
    %422 = vector.shape_cast %421 : vector<16xf32> to vector<16x1xf32>
    %423 = arith.maximumf %399, %422 : vector<16x1xf32>
    %424 = arith.subf %399, %423 : vector<16x1xf32>
    %425 = math.exp %424 : vector<16x1xf32>
    %426 = arith.subf %422, %423 : vector<16x1xf32>
    %427 = math.exp %426 : vector<16x1xf32>
    %428 = arith.mulf %425, %405 : vector<16x1xf32>
    %429 = arith.addf %428, %427 : vector<16x1xf32>
    %430 = vector.broadcast %425 : vector<16x1xf32> to vector<16x32xf32>
    %431 = arith.mulf %430, %410 : vector<16x32xf32>
    %432 = vector.broadcast %427 : vector<16x1xf32> to vector<16x32xf32>
    %433 = arith.mulf %432, %417 : vector<16x32xf32>
    %434 = arith.addf %431, %433 : vector<16x32xf32>
    %c5_156 = arith.constant 5 : index
    %c0_157 = arith.constant 0 : index
    %c0_158 = arith.constant 0 : index
    %435 = vector.load %arg11[%c5_156, %c0_157, %c0_158] : memref<8x16x64xf32, #tpu.memory_space<vmem>>, vector<1x16x64xf32>
    %436 = vector.shape_cast %435 : vector<1x16x64xf32> to vector<16x64xf32>
    %437 = vector.extract_strided_slice %436 {offsets = [0, 0], sizes = [16, 32], strides = [1, 1]} : vector<16x64xf32> to vector<16x32xf32>
    %c2_159 = arith.constant 2 : index
    %c0_160 = arith.constant 0 : index
    %c0_161 = arith.constant 0 : index
    %438 = vector.load %arg11[%c2_159, %c0_160, %c0_161] : memref<8x16x64xf32, #tpu.memory_space<vmem>>, vector<1x16x64xf32>
    %439 = vector.shape_cast %438 : vector<1x16x64xf32> to vector<16x64xf32>
    %440 = vector.extract_strided_slice %439 {offsets = [0, 32], sizes = [16, 32], strides = [1, 1]} : vector<16x64xf32> to vector<16x32xf32>
    %441 = arith.addf %437, %440 : vector<16x32xf32>
    %442 = math.tanh %441 : vector<16x32xf32>
    %443 = vector.broadcast %311 : vector<1x32xf32> to vector<16x32xf32>
    %444 = arith.mulf %442, %443 : vector<16x32xf32>
    %cst_162 = arith.constant dense<0.000000e+00> : vector<16xf32>
    %445 = vector.multi_reduction <add>, %444, %cst_162 [1] : vector<16x32xf32> to vector<16xf32>
    %446 = vector.shape_cast %445 : vector<16xf32> to vector<16x1xf32>
    %447 = arith.maximumf %423, %446 : vector<16x1xf32>
    %448 = arith.subf %423, %447 : vector<16x1xf32>
    %449 = math.exp %448 : vector<16x1xf32>
    %450 = arith.subf %446, %447 : vector<16x1xf32>
    %451 = math.exp %450 : vector<16x1xf32>
    %452 = arith.mulf %449, %429 : vector<16x1xf32>
    %453 = arith.addf %452, %451 : vector<16x1xf32>
    %454 = vector.broadcast %449 : vector<16x1xf32> to vector<16x32xf32>
    %455 = arith.mulf %454, %434 : vector<16x32xf32>
    %456 = vector.broadcast %451 : vector<16x1xf32> to vector<16x32xf32>
    %457 = arith.mulf %456, %441 : vector<16x32xf32>
    %458 = arith.addf %455, %457 : vector<16x32xf32>
    %c6_163 = arith.constant 6 : index
    %c0_164 = arith.constant 0 : index
    %c0_165 = arith.constant 0 : index
    %459 = vector.load %arg11[%c6_163, %c0_164, %c0_165] : memref<8x16x64xf32, #tpu.memory_space<vmem>>, vector<1x16x64xf32>
    %460 = vector.shape_cast %459 : vector<1x16x64xf32> to vector<16x64xf32>
    %461 = vector.extract_strided_slice %460 {offsets = [0, 0], sizes = [16, 32], strides = [1, 1]} : vector<16x64xf32> to vector<16x32xf32>
    %c1_166 = arith.constant 1 : index
    %c0_167 = arith.constant 0 : index
    %c0_168 = arith.constant 0 : index
    %462 = vector.load %arg11[%c1_166, %c0_167, %c0_168] : memref<8x16x64xf32, #tpu.memory_space<vmem>>, vector<1x16x64xf32>
    %463 = vector.shape_cast %462 : vector<1x16x64xf32> to vector<16x64xf32>
    %464 = vector.extract_strided_slice %463 {offsets = [0, 32], sizes = [16, 32], strides = [1, 1]} : vector<16x64xf32> to vector<16x32xf32>
    %465 = arith.addf %461, %464 : vector<16x32xf32>
    %466 = math.tanh %465 : vector<16x32xf32>
    %467 = vector.broadcast %311 : vector<1x32xf32> to vector<16x32xf32>
    %468 = arith.mulf %466, %467 : vector<16x32xf32>
    %cst_169 = arith.constant dense<0.000000e+00> : vector<16xf32>
    %469 = vector.multi_reduction <add>, %468, %cst_169 [1] : vector<16x32xf32> to vector<16xf32>
    %470 = vector.shape_cast %469 : vector<16xf32> to vector<16x1xf32>
    %471 = arith.maximumf %447, %470 : vector<16x1xf32>
    %472 = arith.subf %447, %471 : vector<16x1xf32>
    %473 = math.exp %472 : vector<16x1xf32>
    %474 = arith.subf %470, %471 : vector<16x1xf32>
    %475 = math.exp %474 : vector<16x1xf32>
    %476 = arith.mulf %473, %453 : vector<16x1xf32>
    %477 = arith.addf %476, %475 : vector<16x1xf32>
    %478 = vector.broadcast %473 : vector<16x1xf32> to vector<16x32xf32>
    %479 = arith.mulf %478, %458 : vector<16x32xf32>
    %480 = vector.broadcast %475 : vector<16x1xf32> to vector<16x32xf32>
    %481 = arith.mulf %480, %465 : vector<16x32xf32>
    %482 = arith.addf %479, %481 : vector<16x32xf32>
    %c7_170 = arith.constant 7 : index
    %c0_171 = arith.constant 0 : index
    %c0_172 = arith.constant 0 : index
    %483 = vector.load %arg11[%c7_170, %c0_171, %c0_172] : memref<8x16x64xf32, #tpu.memory_space<vmem>>, vector<1x16x64xf32>
    %484 = vector.shape_cast %483 : vector<1x16x64xf32> to vector<16x64xf32>
    %485 = vector.extract_strided_slice %484 {offsets = [0, 0], sizes = [16, 32], strides = [1, 1]} : vector<16x64xf32> to vector<16x32xf32>
    %c0_173 = arith.constant 0 : index
    %c0_174 = arith.constant 0 : index
    %c0_175 = arith.constant 0 : index
    %486 = vector.load %arg11[%c0_173, %c0_174, %c0_175] : memref<8x16x64xf32, #tpu.memory_space<vmem>>, vector<1x16x64xf32>
    %487 = vector.shape_cast %486 : vector<1x16x64xf32> to vector<16x64xf32>
    %488 = vector.extract_strided_slice %487 {offsets = [0, 32], sizes = [16, 32], strides = [1, 1]} : vector<16x64xf32> to vector<16x32xf32>
    %489 = arith.addf %485, %488 : vector<16x32xf32>
    %490 = math.tanh %489 : vector<16x32xf32>
    %491 = vector.broadcast %311 : vector<1x32xf32> to vector<16x32xf32>
    %492 = arith.mulf %490, %491 : vector<16x32xf32>
    %cst_176 = arith.constant dense<0.000000e+00> : vector<16xf32>
    %493 = vector.multi_reduction <add>, %492, %cst_176 [1] : vector<16x32xf32> to vector<16xf32>
    %494 = vector.shape_cast %493 : vector<16xf32> to vector<16x1xf32>
    %495 = arith.maximumf %471, %494 : vector<16x1xf32>
    %496 = arith.subf %471, %495 : vector<16x1xf32>
    %497 = math.exp %496 : vector<16x1xf32>
    %498 = arith.subf %494, %495 : vector<16x1xf32>
    %499 = math.exp %498 : vector<16x1xf32>
    %500 = arith.mulf %497, %477 : vector<16x1xf32>
    %501 = arith.addf %500, %499 : vector<16x1xf32>
    %502 = vector.broadcast %497 : vector<16x1xf32> to vector<16x32xf32>
    %503 = arith.mulf %502, %482 : vector<16x32xf32>
    %504 = vector.broadcast %499 : vector<16x1xf32> to vector<16x32xf32>
    %505 = arith.mulf %504, %489 : vector<16x32xf32>
    %506 = arith.addf %503, %505 : vector<16x32xf32>
    %507 = vector.broadcast %501 : vector<16x1xf32> to vector<16x32xf32>
    %508 = arith.divf %506, %507 : vector<16x32xf32>
    %509 = math.tanh %508 : vector<16x32xf32>
    %510 = arith.truncf %509 : vector<16x32xf32> to vector<16x32xbf16>
    %c0_177 = arith.constant 0 : index
    %c0_178 = arith.constant 0 : index
    %511 = vector.load %arg6[%c0_177, %c0_178] : memref<32x4xbf16, #tpu.memory_space<vmem>>, vector<32x4xbf16>
    %cst_179 = arith.constant dense<0.000000e+00> : vector<16x4xf32>
    %512 = tpu.matmul %510, %511, %cst_179 {dimension_numbers = #tpu.dot_dimension_numbers<[1], [0], [0], [1], [0, 0, 1, 1], [], []>} : vector<16x32xbf16>, vector<32x4xbf16>, vector<16x4xf32> -> vector<16x4xf32>
    %c0_180 = arith.constant 0 : index
    %c0_181 = arith.constant 0 : index
    %513 = vector.load %arg7[%c0_180, %c0_181] : memref<1x4xf32, #tpu.memory_space<vmem>>, vector<1x4xf32>
    %514 = vector.broadcast %513 : vector<1x4xf32> to vector<16x4xf32>
    %515 = arith.addf %512, %514 : vector<16x4xf32>
    %c0_182 = arith.constant 0 : index
    %c0_183 = arith.constant 0 : index
    %516 = vector.load %arg8[%c0_182, %c0_183] : memref<16x4xf32, #tpu.memory_space<vmem>>, vector<16x4xf32>
    %cst_184 = arith.constant 0.000000e+00 : f32
    %517 = vector.broadcast %cst_184 : f32 to vector<16x4xf32>
    %518 = arith.maximumf %515, %517 : vector<16x4xf32>
    %519 = arith.mulf %515, %516 : vector<16x4xf32>
    %520 = arith.subf %518, %519 : vector<16x4xf32>
    %521 = math.absf %515 : vector<16x4xf32>
    %cst_185 = arith.constant 0.000000e+00 : f32
    %522 = vector.broadcast %cst_185 : f32 to vector<16x4xf32>
    %523 = arith.subf %522, %521 : vector<16x4xf32>
    %524 = math.exp %523 : vector<16x4xf32>
    %cst_186 = arith.constant 1.000000e+00 : f32
    %525 = vector.broadcast %cst_186 : f32 to vector<16x4xf32>
    %526 = arith.addf %525, %524 : vector<16x4xf32>
    %527 = math.log %526 : vector<16x4xf32>
    %528 = arith.addf %520, %527 : vector<16x4xf32>
    %cst_187 = arith.constant dense<0.000000e+00> : vector<16xf32>
    %529 = vector.multi_reduction <add>, %528, %cst_187 [1] : vector<16x4xf32> to vector<16xf32>
    %530 = vector.shape_cast %529 : vector<16xf32> to vector<16x1xf32>
    %c0_188 = arith.constant 0 : index
    %c0_189 = arith.constant 0 : index
    %531 = vector.load %arg9[%c0_188, %c0_189] : memref<16x1xf32, #tpu.memory_space<vmem>>, vector<16x1xf32>
    tpu.vector_store %arg9[%c0_188, %c0_189], %530 {strides = array<i32>} : memref<16x1xf32, #tpu.memory_space<vmem>>, vector<16x1xf32>,
    return
  }
  func.func @transform_0(%arg0: i32) -> (i32, i32, i32) {
    %c0_i32 = arith.constant 0 : i32
    %c0_i32_0 = arith.constant 0 : i32
    %c0_i32_1 = arith.constant 0 : i32
    return %c0_i32, %arg0, %c0_i32_0 : i32, i32, i32
  }
  func.func @transform_1(%arg0: i32) -> (i32, i32) {
    %c0_i32 = arith.constant 0 : i32
    %c0_i32_0 = arith.constant 0 : i32
    %c0_i32_1 = arith.constant 0 : i32
    return %c0_i32, %c0_i32_0 : i32, i32
  }
  func.func @transform_2(%arg0: i32) -> (i32, i32) {
    %c0_i32 = arith.constant 0 : i32
    %c0_i32_0 = arith.constant 0 : i32
    %c0_i32_1 = arith.constant 0 : i32
    return %c0_i32, %c0_i32_0 : i32, i32
  }
  func.func @transform_3(%arg0: i32) -> (i32, i32) {
    %c0_i32 = arith.constant 0 : i32
    %c0_i32_0 = arith.constant 0 : i32
    %c0_i32_1 = arith.constant 0 : i32
    return %c0_i32, %c0_i32_0 : i32, i32
  }
  func.func @transform_4(%arg0: i32) -> (i32, i32) {
    %c0_i32 = arith.constant 0 : i32
    %c0_i32_0 = arith.constant 0 : i32
    %c0_i32_1 = arith.constant 0 : i32
    return %c0_i32, %c0_i32_0 : i32, i32
  }
  func.func @transform_5(%arg0: i32) -> (i32, i32) {
    %c0_i32 = arith.constant 0 : i32
    %c0_i32_0 = arith.constant 0 : i32
    %c0_i32_1 = arith.constant 0 : i32
    return %c0_i32, %c0_i32_0 : i32, i32
  }
  func.func @transform_6(%arg0: i32) -> (i32, i32) {
    %c0_i32 = arith.constant 0 : i32
    %c0_i32_0 = arith.constant 0 : i32
    %c0_i32_1 = arith.constant 0 : i32
    return %c0_i32, %c0_i32_0 : i32, i32
  }
  func.func @transform_7(%arg0: i32) -> (i32, i32) {
    %c0_i32 = arith.constant 0 : i32
    %c0_i32_0 = arith.constant 0 : i32
    return %arg0, %c0_i32 : i32, i32
  }
  func.func @transform_8(%arg0: i32) -> (i32, i32) {
    %c0_i32 = arith.constant 0 : i32
    %c0_i32_0 = arith.constant 0 : i32
    return %arg0, %c0_i32 : i32, i32
  }
}

</mosaic_0001>

<bundles_post_ra>
// kernel: tpu_custom_call.1
= control target key start
LH: loop header
LB: loop body
LE: loop exit
PB: predicated region body
PF: predicated region fallthrough
CT: control target
= control target key end

     0   :  { %13 = vsyncpa [#allocation5], 0  ;;  %s3130_s0 = inlined_call_operand.hbm [shape: bf16[8,32,32], index: 0, kind: input, shape index: {}]   ;;  %s3131_s1 = inlined_call_operand.vmem [shape: bf16[32,256], index: 1, kind: input, shape index: {}]   ;;  %s3132_s2 = inlined_call_operand.vmem [shape: f32[1,256], index: 2, kind: input, shape index: {}]   ;;  %s3133_s3 = inlined_call_operand.hbm [shape: bf16[64,256], index: 3, kind: input, shape index: {}]   ;;  %s3134_s4 = inlined_call_operand.vmem [shape: f32[1,32], index: 4, kind: input, shape index: {}]   ;;  %s3135_s5 = inlined_call_operand.vmem [shape: bf16[32,4], index: 5, kind: input, shape index: {}]   ;;  %s3136_s6 = inlined_call_operand.vmem [shape: f32[1,4], index: 6, kind: input, shape index: {}]   ;;  %s3137_s7 = inlined_call_operand.vmem [shape: f32[32,4], index: 7, kind: input, shape index: {}]   ;;  %s3138_s8 = inlined_call_operand.vmem [shape: f32[32,1], index: 8, kind: output, shape index: {}]  }
   0x1   :  { %15 = vsyncpa [#allocation5 + $0x1], 0 }
   0x2   :  { %16 = vsyncpa [#allocation7], 0  ;;  %s2489_s27 = smov 0   ;;  %s2491_s28 = smov 0  }
   0x3   :  { %s2493_s29 = smov 0   ;;  %s2495_s30 = smov 0  }
   0x4 LB: > { %s3139_s9 = sadd.s32 4294967295, %s2431_s30   ;;  %s2509_s10 = sadd.s32 1, %s2431_s30   ;;  %s2431_s30 = sphi %s2495_s30, %s3148_s30   ;;  %s2427_s29 = sphi %s2493_s29, %s3147_s29   ;;  %s2423_s28 = sphi %s2491_s28, %s3146_s28   ;;  %s2419_s27 = sphi %s2489_s27, %s3145_s27  }
   0x5   : > { %s26_s11 = ssub.s32 %s2431_s30, %s2509_s10  ;;  %s29_s12 = sadd.s32 1, %s2427_s29 }
   0x6   : > { %p27_p0 = scmp.eq.s32.totalorder %s26_s11, 0  ;;  %p36_p1 = scmp.ne.s32.totalorder %s2427_s29, %s2423_s28 }
   0x7   : > { %p37_p2 = scmp.eq.s32.totalorder %s2431_s30, 0  ;;  %p42_p3 = scmp.ne.s32.totalorder %s2423_s28, %s2419_s27 }
   0x8   : > { %s2519_s13 = scalar_select %p27_p0, %s2427_s29, %s29_s12  }
   0x9   : > { %p2521_p4 = por %p37_p2, %p36_p1  ;;  %p2527_p5 = scmp.eq.s32.totalorder %s3139_s9, 0 }
   0xa   : > { %p1900_p6 = scmp.ge.s32.totalorder %s2431_s30, 1  ;;  %p231_p7 = scmp.lt.s32.totalorder %s2431_s30, 3 }
   0xb   : > { %p2535_p8 = por %p2527_p5, %p42_p3  ;;  %s248_s20 = sshll.u32 %s3133_s3, 4  ;;  %s249_s20 = int_to_ptr.hbm [resolvable:$true] %s248_s20 }
   0xc   : > { %p2539_p9 = pnand %p1900_p6, %p231_p7  ;;  %s2433_s21 = smov [#allocation6]  }
   0xd   : > { %s250_s22 = sshll.u32 %s2433_s21, 4  ;;  %s2434_s23 = smov 128   ;;  %s251_s22 = int_to_ptr.vmem [resolvable:$true] %s250_s22 }
   0xe   : > { %p2072_p10 = pneg %p2539_p9  ;;  %s2435_s24 = smov 8  }
   0xf   : > { %p1902_p12 = scmp.ge.s32.totalorder %s2431_s30, 2 }
  0x10   : > { %p2073_p11 = pnand %p2072_p10, %p2527_p5 }
  0x11   : > { %269 = sbr.rel (%p1902_p12) target bundleno = 36 (0x24), region = 40 }
  0x12   : > { %2075 = dma.hbm_to_vmem [thread:$0]  (!%p2073_p11), %s249_s20, 1024, %s251_s22, [#allocation7], %s2434_s23, %s2434_s23, %s2435_s24  }
  0x16   : > { %s273_s25 = sand.u32 1, %s2427_s29   ;;  %s2036_s26 = sshll.u32 %s2431_s30, 3 }
  0x17   : > { %s1903_s27 = sshll.u32 %s273_s25, 6  ;;  %s282_s18 = scalar_lea.hbm %s3130_s0, %s2036_s26 }
  0x18   : > { %s2061_s19 = scalar_select %p2521_p4, [#allocation0], [#allocation10] }
  0x19   : > { %s295_s20 = sshll.u32 %s282_s18, 4  ;;  %s277_s21 = scalar_lea.vmem [#allocation4], %s1903_s27  ;;  %s296_s20 = int_to_ptr.hbm [resolvable:$true] %s295_s20 }
  0x1a   : > { %s297_s22 = sshll.u32 %s277_s21, 4  ;;  %s287_s23 = sld [smem:[%s2061_s19]]   ;;  %s298_s22 = int_to_ptr.vmem [resolvable:$true] %s297_s22 }
  0x1b   : > { %s2436_s24 = smov 256   ;;  %s2437_s9 = smov 128  }
  0x1c   : > { %2062 = sst [smem:[#allocation9]] (%p2521_p4), %s2436_s24  ;;  %s2438_s11 = smov 2  }
  0x1d   : > { %2063 = sst [smem:[#allocation9 + $0x1]] (%p2521_p4), %s2437_s9  ;;  %s2439_s26 = smov 64  }
  0x1e   : > { %2064 = sst [smem:[#allocation9 + $0x2]] (%p2521_p4), %s2438_s11  ;;  %s2440_s18 = smov 4  }
  0x1f   : > { %2065 = sst [smem:[#allocation9 + $0x3]] (%p2521_p4), %s2439_s26  ;;  %s274_s19 = scalar_lea.sflag [#allocation5], %s273_s25 }
  0x20   : > { %s1906_s12 = sshll.u32 %s287_s23, 26  ;;  %2066 = sst [smem:[#allocation9 + $0x4]] (%p2521_p4), %s2439_s26 }
  0x21   : > { %s1907_s27 = sadd.s32 134217728, %s1906_s12  ;;  %2067 = sst [smem:[#allocation9 + $0x5]] (%p2521_p4), %s2440_s18 }
  0x22   : > { %s2441_s21 = smov [#allocation8]  }
  0x23   : > { %2068 = dma.general (%p2521_p4), %s296_s20, 1024, %s298_s22, %s274_s19, %s2441_s21, [#allocation9], %s1907_s27, 0  }
  0x24 PF: > { %331 = sbr.rel (%p2539_p9) target bundleno = 3725 (0xe8d), region = 52  ;;  %s333_s9 = sand.u32 (!%p2539_p9), 1, %s2423_s28  }
  0x25   : > { %s1909_s24 = sshll.u32 (!%p2539_p9), %s333_s9, 6  ;;  %s334_s11 = scalar_lea.sflag (!%p2539_p9), [#allocation5], %s333_s9 }
  0x26   : > { %s2575_s23 = scalar_lea.vmem (!%p2539_p9), [#allocation4], %s1909_s24 }
  0x29   : > { %2410 = dma.done.wait (%p2535_p8), %s334_s11, 1024  }
  0x2a   : > { %2412 = vsyncadd (%p2535_p8), %s334_s11, 4294966272 }
  0x2b   : > { %2414 = dma.done.wait (%p2527_p5), [#allocation7], 1024  }
  0x2c   : > { %2416 = vsyncadd (%p2527_p5), [#allocation7], 4294966272  ;;  %v1957_v0 = vld [vmem:[%s3131_s1 + $0x10] sm:$0xf]  ;;  %v2048_v1 = vld [vmem:[%s3131_s1 + $0x14] sm:$0xf0] }
  0x2d   : > { %v2047_v2 = vld [vmem:[%s3131_s1 + $0x14] sm:$0xf]  ;;  %v1958_v3 = vor.u32 %v2048_v1, %v1957_v0  ;;  %v1959_v4 = vld [vmem:[%s3131_s1 + $0x18] sm:$0xf0]  ;;  %v1949_v5 = vld [vmem:[%s3131_s1] sm:$0xf] }
  0x2e   : > { %v2046_v6 = vld [vmem:[%s3131_s1 + $0x4] sm:$0xf0]  ;;  %v1962_v7 = vor.u32 %v2047_v2, %v1959_v4  ;;  %v2045_v8 = vld [vmem:[%s3131_s1 + $0x4] sm:$0xf]  ;;  %v1951_v9 = vld [vmem:[%s3131_s1 + $0x8] sm:$0xf0] }
  0x2f   : > { %512 = vmatpush.bf16.msra.mxu0 %v1958_v3  ;;  %v1950_v10 = vor.u32 %v2046_v6, %v1949_v5  ;;  %v1954_v11 = vor.u32 %v2045_v8, %v1951_v9  ;;  %v2037_v12 = vld [vmem:[%s2575_s23] sm:$0xff]  ;;  %vm481_vm0 = vcmask 261120   ;;  %s2442_s25 = smov 64   ;;  %v2005_v36 = vld [vmem:[#allocation6 + $0x30] sm:$0xf]  ;;  %v2038_v50 = vld [vmem:[%s2575_s23 + $0x8] sm:$0xff] }
  0x30   : > { %561 = vmatpush.bf16.msra.mxu1 %v1962_v7  ;;  %v415_v13 = vld [vmem:[%s3132_s2] sm:$0x3]  ;;  %v2056_v37 = vld [vmem:[#allocation6 + $0x34] sm:$0xf0]  ;;  %v2055_v38 = vld [vmem:[#allocation6 + $0x34] sm:$0xf] }
  0x31   : > { %v2615_v14 = vperm.slane %v415_v13, 0  ;;  %v2617_v15 = vperm.slane %v415_v13, 1  ;;  %v2625_v39 = vor.u32 %v2056_v37, %v2005_v36  ;;  %v2007_v40 = vld [vmem:[#allocation6 + $0x38] sm:$0xf0]  ;;  %v1997_v41 = vld [vmem:[#allocation6 + $0x20] sm:$0xf] }
  0x32   : > { %v2054_v42 = vld [vmem:[#allocation6 + $0x24] sm:$0xf0]  ;;  %v2627_v43 = vor.u32 %v2055_v38, %v2007_v40  ;;  %v2053_v44 = vld [vmem:[#allocation6 + $0x24] sm:$0xf]  ;;  %v1999_v45 = vld [vmem:[#allocation6 + $0x28] sm:$0xf0] }
  0x33   : > { %513 = vmatpush.bf16.msra.mxu0 %v1950_v10  ;;  %750 = vmatpush.bf16.msra.mxu2 %v2625_v39  ;;  %v2630_v46 = vor.u32 %v2054_v42, %v1997_v41  ;;  %v2633_v47 = vor.u32 %v2053_v44, %v1999_v45  ;;  %v1989_v48 = vld [vmem:[#allocation6 + $0x10] sm:$0xf]  ;;  %v2052_v49 = vld [vmem:[#allocation6 + $0x14] sm:$0xf0]  ;;  %v2051_v51 = vld [vmem:[#allocation6 + $0x14] sm:$0xf] }
  0x34   : > { %562 = vmatpush.bf16.msra.mxu1 %v1954_v11  ;;  %764 = vmatpush.bf16.msra.mxu3 %v2627_v43  ;;  %v1991_v52 = vld [vmem:[#allocation6 + $0x18] sm:$0xf0]  ;;  %v2639_v53 = vor.u32 %v2052_v49, %v1989_v48  ;;  %v1981_v56 = vld [vmem:[#allocation6] sm:$0xf]  ;;  %v2050_v57 = vld [vmem:[#allocation6 + $0x4] sm:$0xf0] }
  0x35   : > { %v2642_v55 = vor.u32 %v2051_v51, %v1991_v52  ;;  %v2049_v59 = vld [vmem:[#allocation6 + $0x4] sm:$0xf]  ;;  %v1983_v60 = vld [vmem:[#allocation6 + $0x8] sm:$0xf0]  ;;  %v2645_v62 = vor.u32 %v2050_v57, %v1981_v56  ;;  %vm692_vm1 = vcmask 523264   ;;  %v2039_v51 = vld [vmem:[%s2575_s23 + $0x10] sm:$0xff] }
  0x36   : > { %1963 = vmatmul.msk.bf16.vlgmr.msra.gmra.mxu0 %vm481_vm0, %v2037_v12  ;;  %v2648_v63 = vor.u32 %v2049_v59, %v1983_v60  ;;  %s3144_s19 = sadd.s32 4294967295, %s2431_s30   ;;  %vm1799_vm10 = vcmask 31744   ;;  %vm1806_vm11 = vcmask 7168  }
  0x37   : > { %1971 = vmatmul.msk.bf16.vlgmr.msra.gmra.mxu1 %vm481_vm0, %v2037_v12  ;;  %751 = vmatpush.bf16.msra.mxu2 %v2630_v46  ;;  %s1911_s21 = sshll.u32 %s3144_s19, 1 }
  0x38   : > { %765 = vmatpush.bf16.msra.mxu3 %v2633_v47  ;;  %p383_p13 = scmp.lt.s32.totalorder %s1911_s21, 3 }
  0x3a   : > { %s3150_s21 = smov (!%p383_p13, %s1911_s21), 3 }
  0x3b   : > { %752 = vmatpush.bf16.msra.mxu2 %v2639_v53  ;;  %s1912_s9 = sshll.u32 %s3150_s21, 3 }
  0x3c   : > { %766 = vmatpush.bf16.msra.mxu3 %v2642_v55  ;;  %s386_s11 = scalar_lea.vmem %s3137_s7, %s1912_s9 }
  0x3f   : > { %753 = vmatpush.bf16.msra.mxu2 %v2645_v62 }
  0x40   : > { %767 = vmatpush.bf16.msra.mxu3 %v2648_v63 }
  0x43   : > { %836 = vmatpush.bf16.msrb.mxu2 %v2625_v39 }
  0x44   : > { %850 = vmatpush.bf16.msrb.mxu3 %v2627_v43 }
  0x46   : > { %1964 = vmatmul.msk.bf16.gmra.mxu0 %vm481_vm0, %v2038_v50 }
  0x47   : > { %1972 = vmatmul.msk.bf16.gmra.mxu1 %vm481_vm0, %v2038_v50  ;;  %837 = vmatpush.bf16.msrb.mxu2 %v2630_v46 }
  0x48   : > { %851 = vmatpush.bf16.msrb.mxu3 %v2633_v47 }
  0x4b   : > { %838 = vmatpush.bf16.msrb.mxu2 %v2639_v53 }
  0x4c   : > { %852 = vmatpush.bf16.msrb.mxu3 %v2642_v55 }
  0x4f   : > { %839 = vmatpush.bf16.msrb.mxu2 %v2645_v62 }
  0x50   : > { %853 = vmatpush.bf16.msrb.mxu3 %v2648_v63 }
  0x56   : > { %1965 = vmatmul.msk.bf16.gmra.mxu0 %vm481_vm0, %v2039_v51 }
  0x57   : > { %1973 = vmatmul.msk.bf16.gmra.mxu1 %vm481_vm0, %v2039_v51 }
  0xb3   : > { %v515_v16 = vpop.f32.mrf.mxu0 }
  0xb4   : > { %v516_v17 = vadd.f32 %v515_v16, %v2615_v14  ;;  %v564_v18 = vpop.f32.mrf.mxu1 }
  0xb5   : > { %v565_v20 = vadd.f32 %v564_v18, %v2617_v15 }
  0xb6   : > { %v648_v19 = vmul.f32 0.5, %v516_v17 }
  0xb7   : > { %v658_v54 = vmul.f32 0.5, %v565_v20 }
  0xb8   : > { %2123 = vtanh.f32 %v648_v19 }
  0xb9   : > { %2125 = vtanh.f32 %v565_v20 }
  0xbb   : > { %v517_v21 = vpop.f32.mrf.mxu0 }
  0xbc   : > { %v518_v22 = vadd.f32 %v517_v21, %v2615_v14  ;;  %v566_v23 = vpop.f32.mrf.mxu1 }
  0xbd   : > { %v567_v28 = vadd.f32 %v566_v23, %v2617_v15 }
  0xbe   : > { %v2124_v24 = vpop.eup %2123  ;;  %v649_v25 = vmul.f32 0.5, %v518_v22 }
  0xbf   : > { %v652_v26 = vadd.f32 1.0, %v2124_v24  ;;  %v2126_v27 = vpop.eup %2125  ;;  %v659_v58 = vmul.f32 0.5, %v567_v28 }
  0xc0   : > { %2127 = vtanh.f32 %v649_v25 }
  0xc1   : > { %v654_v29 = vmul.f32 0.5, %v652_v26  ;;  %2129 = vtanh.f32 %v567_v28 }
  0xc2   : > { %2131 = vtanh.f32 %v658_v54 }
  0xc3   : > { %v668_v30 = vmul.f32 %v2126_v27, %v654_v29  ;;  %2133 = vtanh.f32 %v659_v58  ;;  %v666_v0 = vmul.f32 0.0, %v654_v29  ;;  %v520_v19 = vpop.f32.mrf.mxu0 }
  0xc4   : > { %v521_v20 = vadd.f32 %v520_v19, %v2615_v14  ;;  %v569_v21 = vpop.f32.mrf.mxu1 }
  0xc5   : > { %672 = vrot.lane.b32.xlu0 %v668_v30, %s2442_s25  ;;  %v570_v24 = vadd.f32 %v569_v21, %v2617_v15 }
  0xc6   : > { %v2128_v31 = vpop.eup %2127 }
  0xc7   : > { %v653_v32 = vadd.f32 1.0, %v2128_v31  ;;  %v2130_v34 = vpop.eup %2129 }
  0xc8   : > { %v2132_v3 = vpop.eup %2131 }
  0xc9   : > { %v655_v33 = vmul.f32 0.5, %v653_v32  ;;  %v2134_v5 = vpop.eup %2133  ;;  %v662_v7 = vadd.f32 1.0, %v2132_v3 }
  0xca   : > { %v663_v8 = vadd.f32 1.0, %v2134_v5 }
  0xcb   : > { %v669_v35 = vmul.f32 %v2130_v34, %v655_v33  ;;  %v667_v2 = vmul.f32 0.0, %v655_v33  ;;  %v664_v10 = vmul.f32 0.5, %v662_v7  ;;  %v522_v27 = vpop.f32.mrf.mxu0 }
  0xcc   : > { %v665_v11 = vmul.f32 0.5, %v663_v8  ;;  %v523_v29 = vadd.f32 %v522_v27, %v2615_v14  ;;  %v571_v30 = vpop.f32.mrf.mxu1 }
  0xcd   : > { %674 = vrot.lane.b32.xlu0 %v669_v35, %s2442_s25  ;;  %v572_v35 = vadd.f32 %v571_v30, %v2617_v15 }
 0x137   : > { %v673_v61 = vpop.permute.xlu0 %672 }
 0x138   : > { %v2650_v1 = vadd.f32 %v673_v61, %v666_v0 }
 0x13a   : > { %2135 = vtanh.f32 %v2650_v1 }
 0x13f   : > { %v675_v4 = vpop.permute.xlu0 %674 }
 0x140   : > { %v2657_v6 = vadd.f32 %v675_v4, %v667_v2  ;;  %v2136_v9 = vpop.eup %2135 }
 0x141   : > { %v2664_v13 = vmul.f32 %v2136_v9, %v664_v10 }
 0x142   : > { %2137 = vtanh.f32 %v2657_v6 }
 0x148   : > { %v2138_v12 = vpop.eup %2137 }
 0x149   : > { %v2666_v16 = vmul.f32 %v2138_v12, %v665_v11  ;;  %v525_v12 = vpop.f32.mrf.mxu0 }
 0x14b   : > { %v695_v17 = vpack.c.bf16 %v2666_v16, %v2664_v13 }
 0x14d   : > { %701 = vrot.lane.b32.xlu1 %v695_v17, %s2442_s25  ;;  %v526_v17 = vadd.f32 %v525_v12, %v2615_v14 }
 0x1bf   : > { %v702_v18 = vpop.permute.xlu1 %701 }
 0x1c0   : > { %2011 = vmatmul.msk.bf16.vlgmr.msra.gmra.mxu2 %vm692_vm1, %v702_v18  ;;  %2012 = vmatmul.msk.bf16.vlgmr.msra.gmra.mxu3 %vm692_vm1, %v702_v18  ;;  %v574_v18 = vpop.f32.mrf.mxu1 }
 0x1c1   : > { %922 = vmatpush.bf16.msra.mxu2 %v2625_v39  ;;  %936 = vmatpush.bf16.msra.mxu3 %v2627_v43  ;;  %v575_v21 = vadd.f32 %v574_v18, %v2617_v15 }
 0x1c5   : > { %923 = vmatpush.bf16.msra.mxu2 %v2630_v46  ;;  %937 = vmatpush.bf16.msra.mxu3 %v2633_v47 }
 0x1c8   : > { %v576_v27 = vpop.f32.mrf.mxu1 }
 0x1c9   : > { %924 = vmatpush.bf16.msra.mxu2 %v2639_v53  ;;  %938 = vmatpush.bf16.msra.mxu3 %v2642_v55 }
 0x1cd   : > { %925 = vmatpush.bf16.msra.mxu2 %v2645_v62  ;;  %939 = vmatpush.bf16.msra.mxu3 %v2648_v63 }
 0x243   : > { %v755_v22 = vpop.f32.mrf.mxu2  ;;  %v769_v23 = vpop.f32.mrf.mxu3 }
 0x244   : > { %v756_v25 = vadd.f32 %v755_v22, %v521_v20  ;;  %v770_v28 = vadd.f32 %v769_v23, %v570_v24  ;;  %v527_v24 = vpop.f32.mrf.mxu0 }
 0x246   : > { %v774_v26 = vmul.f32 0.5, %v756_v25  ;;  %v784_v52 = vmul.f32 0.5, %v770_v28 }
 0x248   : > { %2139 = vtanh.f32 %v774_v26  ;;  %v528_v26 = vadd.f32 %v527_v24, %v2615_v14 }
 0x249   : > { %2141 = vtanh.f32 %v770_v28 }
 0x24b   : > { %v757_v31 = vpop.f32.mrf.mxu2  ;;  %v771_v33 = vpop.f32.mrf.mxu3 }
 0x24c   : > { %v758_v32 = vadd.f32 %v757_v31, %v523_v29  ;;  %v772_v38 = vadd.f32 %v771_v33, %v572_v35 }
 0x24e   : > { %v2140_v34 = vpop.eup %2139  ;;  %v775_v36 = vmul.f32 0.5, %v758_v32  ;;  %v785_v54 = vmul.f32 0.5, %v772_v38  ;;  %v577_v32 = vadd.f32 %v576_v27, %v2617_v15 }
 0x24f   : > { %v778_v37 = vadd.f32 1.0, %v2140_v34  ;;  %v2142_v41 = vpop.eup %2141 }
 0x250   : > { %2143 = vtanh.f32 %v775_v36 }
 0x251   : > { %v780_v40 = vmul.f32 0.5, %v778_v37  ;;  %2145 = vtanh.f32 %v772_v38 }
 0x252   : > { %2147 = vtanh.f32 %v784_v52 }
 0x253   : > { %v794_v42 = vmul.f32 %v2142_v41, %v780_v40  ;;  %2149 = vtanh.f32 %v785_v54  ;;  %v792_v59 = vmul.f32 %v780_v40, %v2650_v1 }
 0x255   : > { %798 = vrot.lane.b32.xlu1 %v794_v42, %s2442_s25 }
 0x256   : > { %v2144_v44 = vpop.eup %2143 }
 0x257   : > { %v779_v45 = vadd.f32 1.0, %v2144_v44  ;;  %v2146_v49 = vpop.eup %2145 }
 0x258   : > { %v2148_v60 = vpop.eup %2147 }
 0x259   : > { %v781_v48 = vmul.f32 0.5, %v779_v45  ;;  %v2150_v0 = vpop.eup %2149  ;;  %v788_v3 = vadd.f32 1.0, %v2148_v60 }
 0x25a   : > { %v789_v4 = vadd.f32 1.0, %v2150_v0 }
 0x25b   : > { %v795_v50 = vmul.f32 %v2146_v49, %v781_v48  ;;  %v793_v57 = vmul.f32 %v781_v48, %v2657_v6  ;;  %v790_v7 = vmul.f32 0.5, %v788_v3  ;;  %v2040_v48 = vld [vmem:[%s2575_s23 + $0x18] sm:$0xff] }
 0x25c   : > { %v791_v8 = vmul.f32 0.5, %v789_v4  ;;  %1966 = vmatmul.msk.bf16.gmra.mxu0 %vm481_vm0, %v2040_v48  ;;  %1974 = vmatmul.msk.bf16.gmra.mxu1 %vm481_vm0, %v2040_v48 }
 0x25d   : > { %800 = vrot.lane.b32.xlu2 %v795_v50, %s2442_s25 }
 0x2b7   : > { %v801_v56 = vpop.permute.xlu2 %800 }
 0x2b8   : > { %v2693_v58 = vadd.f32 %v801_v56, %v793_v57 }
 0x2ba   : > { %2151 = vtanh.f32 %v2693_v58 }
 0x2c0   : > { %v2152_v5 = vpop.eup %2151 }
 0x2c1   : > { %v2702_v10 = vmul.f32 %v2152_v5, %v791_v8 }
 0x2c7   : > { %v799_v61 = vpop.permute.xlu1 %798 }
 0x2c8   : > { %v2697_v2 = vadd.f32 %v799_v61, %v792_v59 }
 0x2ca   : > { %2153 = vtanh.f32 %v2697_v2 }
 0x2d0   : > { %v2154_v9 = vpop.eup %2153 }
 0x2d1   : > { %v2700_v6 = vmul.f32 %v2154_v9, %v790_v7 }
 0x2d3   : > { %v821_v1 = vpack.c.bf16 %v2702_v10, %v2700_v6 }
 0x2d5   : > { %827 = vrot.lane.b32.xlu2 %v821_v1, %s2442_s25 }
 0x32f   : > { %v828_v11 = vpop.permute.xlu2 %827 }
 0x330   : > { %2013 = vmatmul.msk.bf16.vlgmr.msrb.gmra.mxu2 %vm692_vm1, %v828_v11  ;;  %2014 = vmatmul.msk.bf16.vlgmr.msrb.gmra.mxu3 %vm692_vm1, %v828_v11  ;;  %v530_v11 = vpop.f32.mrf.mxu0 }
 0x331   : > { %1008 = vmatpush.bf16.msrb.mxu2 %v2625_v39  ;;  %1022 = vmatpush.bf16.msrb.mxu3 %v2627_v43  ;;  %v531_v12 = vadd.f32 %v530_v11, %v2615_v14 }
 0x335   : > { %1009 = vmatpush.bf16.msrb.mxu2 %v2630_v46  ;;  %1023 = vmatpush.bf16.msrb.mxu3 %v2633_v47 }
 0x339   : > { %1010 = vmatpush.bf16.msrb.mxu2 %v2639_v53  ;;  %1024 = vmatpush.bf16.msrb.mxu3 %v2642_v55 }
 0x33d   : > { %1011 = vmatpush.bf16.msrb.mxu2 %v2645_v62  ;;  %1025 = vmatpush.bf16.msrb.mxu3 %v2648_v63 }
 0x3b3   : > { %v841_v19 = vpop.f32.mrf.mxu2  ;;  %v855_v20 = vpop.f32.mrf.mxu3 }
 0x3b4   : > { %v842_v22 = vadd.f32 %v841_v19, %v526_v17  ;;  %v856_v25 = vadd.f32 %v855_v20, %v575_v21  ;;  %v579_v17 = vpop.f32.mrf.mxu1 }
 0x3b5   : > { %v580_v20 = vadd.f32 %v579_v17, %v2617_v15 }
 0x3b6   : > { %v860_v23 = vmul.f32 0.5, %v842_v22  ;;  %v870_v49 = vmul.f32 0.5, %v856_v25 }
 0x3b8   : > { %2155 = vtanh.f32 %v860_v23  ;;  %v532_v23 = vpop.f32.mrf.mxu0 }
 0x3b9   : > { %2157 = vtanh.f32 %v856_v25  ;;  %v533_v25 = vadd.f32 %v532_v23, %v2615_v14 }
 0x3bb   : > { %v843_v28 = vpop.f32.mrf.mxu2  ;;  %v857_v30 = vpop.f32.mrf.mxu3 }
 0x3bc   : > { %v844_v29 = vadd.f32 %v843_v28, %v528_v26  ;;  %v858_v35 = vadd.f32 %v857_v30, %v577_v32  ;;  %v581_v26 = vpop.f32.mrf.mxu1 }
 0x3be   : > { %v2156_v31 = vpop.eup %2155  ;;  %v861_v33 = vmul.f32 0.5, %v844_v29  ;;  %v871_v50 = vmul.f32 0.5, %v858_v35 }
 0x3bf   : > { %v864_v34 = vadd.f32 1.0, %v2156_v31  ;;  %v2158_v37 = vpop.eup %2157  ;;  %v582_v31 = vadd.f32 %v581_v26, %v2617_v15 }
 0x3c0   : > { %2159 = vtanh.f32 %v861_v33 }
 0x3c1   : > { %v866_v36 = vmul.f32 0.5, %v864_v34  ;;  %2161 = vtanh.f32 %v858_v35 }
 0x3c2   : > { %2163 = vtanh.f32 %v870_v49 }
 0x3c3   : > { %v880_v38 = vmul.f32 %v2158_v37, %v866_v36  ;;  %2165 = vtanh.f32 %v871_v50  ;;  %v878_v52 = vmul.f32 %v866_v36, %v2697_v2 }
 0x3c5   : > { %884 = vrot.lane.b32.xlu0 %v880_v38, %s2442_s25 }
 0x3c6   : > { %v2160_v40 = vpop.eup %2159 }
 0x3c7   : > { %v865_v41 = vadd.f32 1.0, %v2160_v40  ;;  %v2162_v44 = vpop.eup %2161 }
 0x3c8   : > { %v2164_v57 = vpop.eup %2163 }
 0x3c9   : > { %v867_v42 = vmul.f32 0.5, %v865_v41  ;;  %v2166_v60 = vpop.eup %2165  ;;  %v874_v0 = vadd.f32 1.0, %v2164_v57 }
 0x3ca   : > { %v875_v3 = vadd.f32 1.0, %v2166_v60 }
 0x3cb   : > { %v881_v45 = vmul.f32 %v2162_v44, %v867_v42  ;;  %v879_v56 = vmul.f32 %v867_v42, %v2693_v58  ;;  %v876_v5 = vmul.f32 0.5, %v874_v0 }
 0x3cc   : > { %v877_v7 = vmul.f32 0.5, %v875_v3 }
 0x3cd   : > { %886 = vrot.lane.b32.xlu1 %v881_v45, %s2442_s25  ;;  %v2041_v45 = vld [vmem:[%s2575_s23 + $0x20] sm:$0xff] }
 0x3ce   : > { %1967 = vmatmul.msk.bf16.gmra.mxu0 %vm481_vm0, %v2041_v45  ;;  %1975 = vmatmul.msk.bf16.gmra.mxu1 %vm481_vm0, %v2041_v45 }
 0x437   : > { %v885_v51 = vpop.permute.xlu0 %884 }
 0x438   : > { %v2727_v54 = vadd.f32 %v885_v51, %v878_v52 }
 0x43a   : > { %2167 = vtanh.f32 %v2727_v54 }
 0x43f   : > { %v887_v59 = vpop.permute.xlu1 %886 }
 0x440   : > { %v2731_v61 = vadd.f32 %v887_v59, %v879_v56  ;;  %v2168_v4 = vpop.eup %2167 }
 0x441   : > { %v2734_v2 = vmul.f32 %v2168_v4, %v876_v5 }
 0x442   : > { %2169 = vtanh.f32 %v2731_v61 }
 0x448   : > { %v2170_v8 = vpop.eup %2169 }
 0x449   : > { %v2736_v9 = vmul.f32 %v2170_v8, %v877_v7 }
 0x44b   : > { %v907_v58 = vpack.c.bf16 %v2736_v9, %v2734_v2 }
 0x44d   : > { %913 = vrot.lane.b32.xlu2 %v907_v58, %s2442_s25 }
 0x4a7   : > { %v914_v1 = vpop.permute.xlu2 %913 }
 0x4a8   : > { %2015 = vmatmul.msk.bf16.vlgmr.msra.gmra.mxu2 %vm692_vm1, %v914_v1  ;;  %2016 = vmatmul.msk.bf16.vlgmr.msra.gmra.mxu3 %vm692_vm1, %v914_v1 }
 0x4a9   : > { %1094 = vmatpush.bf16.msra.mxu2 %v2625_v39  ;;  %1108 = vmatpush.bf16.msra.mxu3 %v2627_v43 }
 0x4ad   : > { %1095 = vmatpush.bf16.msra.mxu2 %v2630_v46  ;;  %1109 = vmatpush.bf16.msra.mxu3 %v2633_v47 }
 0x4b1   : > { %1096 = vmatpush.bf16.msra.mxu2 %v2639_v53  ;;  %1110 = vmatpush.bf16.msra.mxu3 %v2642_v55 }
 0x4b5   : > { %1097 = vmatpush.bf16.msra.mxu2 %v2645_v62  ;;  %1111 = vmatpush.bf16.msra.mxu3 %v2648_v63 }
 0x52b   : > { %v927_v18 = vpop.f32.mrf.mxu2  ;;  %v941_v19 = vpop.f32.mrf.mxu3 }
 0x52c   : > { %v928_v21 = vadd.f32 %v927_v18, %v531_v12  ;;  %v942_v24 = vadd.f32 %v941_v19, %v580_v20  ;;  %v535_v12 = vpop.f32.mrf.mxu0  ;;  %v584_v18 = vpop.f32.mrf.mxu1 }
 0x52d   : > { %v536_v17 = vadd.f32 %v535_v12, %v2615_v14 }
 0x52e   : > { %v946_v22 = vmul.f32 0.5, %v928_v21  ;;  %v956_v48 = vmul.f32 0.5, %v942_v24  ;;  %v585_v21 = vadd.f32 %v584_v18, %v2617_v15 }
 0x530   : > { %2171 = vtanh.f32 %v946_v22 }
 0x531   : > { %2173 = vtanh.f32 %v942_v24 }
 0x533   : > { %v929_v27 = vpop.f32.mrf.mxu2  ;;  %v943_v29 = vpop.f32.mrf.mxu3 }
 0x534   : > { %v930_v28 = vadd.f32 %v929_v27, %v533_v25  ;;  %v944_v34 = vadd.f32 %v943_v29, %v582_v31  ;;  %v537_v24 = vpop.f32.mrf.mxu0  ;;  %v586_v27 = vpop.f32.mrf.mxu1 }
 0x535   : > { %v538_v26 = vadd.f32 %v537_v24, %v2615_v14 }
 0x536   : > { %v2172_v30 = vpop.eup %2171  ;;  %v947_v32 = vmul.f32 0.5, %v930_v28  ;;  %v957_v49 = vmul.f32 0.5, %v944_v34 }
 0x537   : > { %v950_v33 = vadd.f32 1.0, %v2172_v30  ;;  %v2174_v36 = vpop.eup %2173 }
 0x538   : > { %2175 = vtanh.f32 %v947_v32  ;;  %v587_v32 = vadd.f32 %v586_v27, %v2617_v15 }
 0x539   : > { %v952_v35 = vmul.f32 0.5, %v950_v33  ;;  %2177 = vtanh.f32 %v944_v34 }
 0x53a   : > { %2179 = vtanh.f32 %v956_v48  ;;  %v2042_v48 = vld [vmem:[%s2575_s23 + $0x28] sm:$0xff] }
 0x53b   : > { %v966_v37 = vmul.f32 %v2174_v36, %v952_v35  ;;  %2181 = vtanh.f32 %v957_v49  ;;  %v964_v51 = vmul.f32 %v952_v35, %v2727_v54  ;;  %1968 = vmatmul.msk.bf16.gmra.mxu0 %vm481_vm0, %v2042_v48  ;;  %1976 = vmatmul.msk.bf16.gmra.mxu1 %vm481_vm0, %v2042_v48 }
 0x53d   : > { %970 = vrot.lane.b32.xlu0 %v966_v37, %s2442_s25 }
 0x53e   : > { %v2176_v38 = vpop.eup %2175 }
 0x53f   : > { %v951_v40 = vadd.f32 1.0, %v2176_v38  ;;  %v2178_v42 = vpop.eup %2177 }
 0x540   : > { %v2180_v57 = vpop.eup %2179 }
 0x541   : > { %v953_v41 = vmul.f32 0.5, %v951_v40  ;;  %v2182_v60 = vpop.eup %2181  ;;  %v960_v3 = vadd.f32 1.0, %v2180_v57 }
 0x542   : > { %v961_v4 = vadd.f32 1.0, %v2182_v60 }
 0x543   : > { %v967_v44 = vmul.f32 %v2178_v42, %v953_v41  ;;  %v965_v56 = vmul.f32 %v953_v41, %v2731_v61  ;;  %v962_v7 = vmul.f32 0.5, %v960_v3 }
 0x544   : > { %v963_v8 = vmul.f32 0.5, %v961_v4 }
 0x545   : > { %972 = vrot.lane.b32.xlu1 %v967_v44, %s2442_s25 }
 0x5af   : > { %v971_v50 = vpop.permute.xlu0 %970 }
 0x5b0   : > { %v2761_v52 = vadd.f32 %v971_v50, %v964_v51 }
 0x5b2   : > { %2183 = vtanh.f32 %v2761_v52 }
 0x5b7   : > { %v973_v59 = vpop.permute.xlu1 %972 }
 0x5b8   : > { %v2765_v0 = vadd.f32 %v973_v59, %v965_v56  ;;  %v2184_v5 = vpop.eup %2183 }
 0x5b9   : > { %v2768_v54 = vmul.f32 %v2184_v5, %v962_v7 }
 0x5ba   : > { %2185 = vtanh.f32 %v2765_v0 }
 0x5c0   : > { %v2186_v58 = vpop.eup %2185 }
 0x5c1   : > { %v2770_v1 = vmul.f32 %v2186_v58, %v963_v8 }
 0x5c3   : > { %v993_v61 = vpack.c.bf16 %v2770_v1, %v2768_v54 }
 0x5c5   : > { %999 = vrot.lane.b32.xlu2 %v993_v61, %s2442_s25 }
 0x61f   : > { %v1000_v11 = vpop.permute.xlu2 %999 }
 0x620   : > { %2017 = vmatmul.msk.bf16.vlgmr.msrb.gmra.mxu2 %vm692_vm1, %v1000_v11  ;;  %2018 = vmatmul.msk.bf16.vlgmr.msrb.gmra.mxu3 %vm692_vm1, %v1000_v11 }
 0x621   : > { %1180 = vmatpush.bf16.msrb.mxu2 %v2625_v39  ;;  %1194 = vmatpush.bf16.msrb.mxu3 %v2627_v43 }
 0x625   : > { %1181 = vmatpush.bf16.msrb.mxu2 %v2630_v46  ;;  %1195 = vmatpush.bf16.msrb.mxu3 %v2633_v47 }
 0x629   : > { %1182 = vmatpush.bf16.msrb.mxu2 %v2639_v53  ;;  %1196 = vmatpush.bf16.msrb.mxu3 %v2642_v55 }
 0x62d   : > { %1183 = vmatpush.bf16.msrb.mxu2 %v2645_v62  ;;  %1197 = vmatpush.bf16.msrb.mxu3 %v2648_v63 }
 0x6a3   : > { %v1013_v19 = vpop.f32.mrf.mxu2  ;;  %v1027_v20 = vpop.f32.mrf.mxu3 }
 0x6a4   : > { %v1014_v22 = vadd.f32 %v1013_v19, %v536_v17  ;;  %v1028_v25 = vadd.f32 %v1027_v20, %v585_v21  ;;  %v540_v19 = vpop.f32.mrf.mxu0  ;;  %v589_v21 = vpop.f32.mrf.mxu1 }
 0x6a5   : > { %v541_v20 = vadd.f32 %v540_v19, %v2615_v14 }
 0x6a6   : > { %v1032_v23 = vmul.f32 0.5, %v1014_v22  ;;  %v1042_v49 = vmul.f32 0.5, %v1028_v25 }
 0x6a8   : > { %2187 = vtanh.f32 %v1032_v23 }
 0x6a9   : > { %2189 = vtanh.f32 %v1028_v25 }
 0x6ab   : > { %v1015_v28 = vpop.f32.mrf.mxu2  ;;  %v1029_v30 = vpop.f32.mrf.mxu3 }
 0x6ac   : > { %v1016_v29 = vadd.f32 %v1015_v28, %v538_v26  ;;  %v1030_v35 = vadd.f32 %v1029_v30, %v587_v32  ;;  %v542_v24 = vpop.f32.mrf.mxu0 }
 0x6ae   : > { %v2188_v31 = vpop.eup %2187  ;;  %v1033_v33 = vmul.f32 0.5, %v1016_v29  ;;  %v1043_v50 = vmul.f32 0.5, %v1030_v35 }
 0x6af   : > { %v1036_v34 = vadd.f32 1.0, %v2188_v31  ;;  %v2190_v37 = vpop.eup %2189 }
 0x6b0   : > { %2191 = vtanh.f32 %v1033_v33 }
 0x6b1   : > { %v1038_v36 = vmul.f32 0.5, %v1036_v34  ;;  %2193 = vtanh.f32 %v1030_v35 }
 0x6b2   : > { %2195 = vtanh.f32 %v1042_v49 }
 0x6b3   : > { %v1052_v38 = vmul.f32 %v2190_v37, %v1038_v36  ;;  %2197 = vtanh.f32 %v1043_v50  ;;  %v1050_v56 = vmul.f32 %v1038_v36, %v2761_v52 }
 0x6b5   : > { %1056 = vrot.lane.b32.xlu0 %v1052_v38, %s2442_s25 }
 0x6b6   : > { %v2192_v40 = vpop.eup %2191 }
 0x6b7   : > { %v1037_v41 = vadd.f32 1.0, %v2192_v40  ;;  %v2194_v44 = vpop.eup %2193  ;;  %v2043_v40 = vld [vmem:[%s2575_s23 + $0x30] sm:$0xff] }
 0x6b8   : > { %v2196_v60 = vpop.eup %2195  ;;  %1969 = vmatmul.msk.bf16.gmra.mxu0 %vm481_vm0, %v2043_v40  ;;  %1977 = vmatmul.msk.bf16.gmra.mxu1 %vm481_vm0, %v2043_v40 }
 0x6b9   : > { %v1039_v42 = vmul.f32 0.5, %v1037_v41  ;;  %v2198_v4 = vpop.eup %2197  ;;  %v1046_v7 = vadd.f32 1.0, %v2196_v60 }
 0x6ba   : > { %v1047_v8 = vadd.f32 1.0, %v2198_v4 }
 0x6bb   : > { %v1053_v45 = vmul.f32 %v2194_v44, %v1039_v42  ;;  %v1051_v59 = vmul.f32 %v1039_v42, %v2765_v0  ;;  %v1048_v61 = vmul.f32 0.5, %v1046_v7 }
 0x6bc   : > { %v1049_v11 = vmul.f32 0.5, %v1047_v8 }
 0x6bd   : > { %1058 = vrot.lane.b32.xlu1 %v1053_v45, %s2442_s25 }
 0x727   : > { %v1057_v51 = vpop.permute.xlu0 %1056 }
 0x728   : > { %v2795_v57 = vadd.f32 %v1057_v51, %v1050_v56 }
 0x72a   : > { %2199 = vtanh.f32 %v2795_v57 }
 0x72f   : > { %v1059_v3 = vpop.permute.xlu1 %1058 }
 0x730   : > { %v2799_v5 = vadd.f32 %v1059_v3, %v1051_v59  ;;  %v2200_v58 = vpop.eup %2199 }
 0x731   : > { %v2802_v52 = vmul.f32 %v2200_v58, %v1048_v61 }
 0x732   : > { %2201 = vtanh.f32 %v2799_v5 }
 0x738   : > { %v2202_v12 = vpop.eup %2201 }
 0x739   : > { %v2804_v17 = vmul.f32 %v2202_v12, %v1049_v11  ;;  %v545_v12 = vpop.f32.mrf.mxu0 }
 0x73b   : > { %v1079_v0 = vpack.c.bf16 %v2804_v17, %v2802_v52 }
 0x73d   : > { %1085 = vrot.lane.b32.xlu2 %v1079_v0, %s2442_s25  ;;  %v546_v0 = vadd.f32 %v545_v12, %v2615_v14 }
 0x797   : > { %v1086_v18 = vpop.permute.xlu2 %1085 }
 0x798   : > { %2019 = vmatmul.msk.bf16.vlgmr.msra.gmra.mxu2 %vm692_vm1, %v1086_v18  ;;  %2020 = vmatmul.msk.bf16.vlgmr.msra.gmra.mxu3 %vm692_vm1, %v1086_v18 }
 0x799   : > { %1266 = vmatpush.bf16.msra.mxu2 %v2625_v39  ;;  %1280 = vmatpush.bf16.msra.mxu3 %v2627_v43  ;;  %v590_v43 = vadd.f32 %v589_v21, %v2617_v15 }
 0x79d   : > { %1267 = vmatpush.bf16.msra.mxu2 %v2630_v46  ;;  %1281 = vmatpush.bf16.msra.mxu3 %v2633_v47 }
 0x7a1   : > { %1268 = vmatpush.bf16.msra.mxu2 %v2639_v53  ;;  %1282 = vmatpush.bf16.msra.mxu3 %v2642_v55  ;;  %v543_v53 = vadd.f32 %v542_v24, %v2615_v14  ;;  %v591_v55 = vpop.f32.mrf.mxu1 }
 0x7a2   : > { %v592_v27 = vadd.f32 %v591_v55, %v2617_v15 }
 0x7a5   : > { %1269 = vmatpush.bf16.msra.mxu2 %v2645_v62  ;;  %1283 = vmatpush.bf16.msra.mxu3 %v2648_v63 }
 0x7a9   : > { %v594_v18 = vpop.f32.mrf.mxu1 }
 0x7aa   : > { %v595_v21 = vadd.f32 %v594_v18, %v2617_v15 }
 0x7b1   : > { %v596_v24 = vpop.f32.mrf.mxu1 }
 0x81b   : > { %v1099_v22 = vpop.f32.mrf.mxu2  ;;  %v1113_v39 = vpop.f32.mrf.mxu3 }
 0x81c   : > { %v1100_v23 = vadd.f32 %v1099_v22, %v541_v20  ;;  %v1114_v47 = vadd.f32 %v1113_v39, %v590_v43  ;;  %v547_v43 = vpop.f32.mrf.mxu0 }
 0x81e   : > { %v1118_v46 = vmul.f32 0.5, %v1100_v23  ;;  %v1128_v41 = vmul.f32 0.5, %v1114_v47 }
 0x820   : > { %2203 = vtanh.f32 %v1118_v46  ;;  %v548_v46 = vadd.f32 %v547_v43, %v2615_v14 }
 0x821   : > { %2205 = vtanh.f32 %v1114_v47 }
 0x823   : > { %v1101_v25 = vpop.f32.mrf.mxu2  ;;  %v1115_v63 = vpop.f32.mrf.mxu3 }
 0x824   : > { %v1102_v62 = vadd.f32 %v1101_v25, %v543_v53  ;;  %v1116_v30 = vadd.f32 %v1115_v63, %v592_v27 }
 0x826   : > { %v2204_v26 = vpop.eup %2203  ;;  %v1119_v28 = vmul.f32 0.5, %v1102_v62  ;;  %v1129_v42 = vmul.f32 0.5, %v1116_v30  ;;  %v597_v62 = vadd.f32 %v596_v24, %v2617_v15 }
 0x827   : > { %v1122_v29 = vadd.f32 1.0, %v2204_v26  ;;  %v2206_v32 = vpop.eup %2205 }
 0x828   : > { %2207 = vtanh.f32 %v1119_v28 }
 0x829   : > { %v1124_v31 = vmul.f32 0.5, %v1122_v29  ;;  %2209 = vtanh.f32 %v1116_v30 }
 0x82a   : > { %2211 = vtanh.f32 %v1128_v41 }
 0x82b   : > { %v1138_v33 = vmul.f32 %v2206_v32, %v1124_v31  ;;  %2213 = vtanh.f32 %v1129_v42  ;;  %v1136_v45 = vmul.f32 %v1124_v31, %v2795_v57  ;;  %v2044_v42 = vld [vmem:[%s2575_s23 + $0x38] sm:$0xff]  ;;  %s2443_s23 = smov 96  }
 0x82c   : > { %1970 = vmatmul.msk.bf16.gmra.mxu0 %vm481_vm0, %v2044_v42  ;;  %1978 = vmatmul.msk.bf16.gmra.mxu1 %vm481_vm0, %v2044_v42 }
 0x82d   : > { %1142 = vrot.lane.b32.xlu0 %v1138_v33, %s2442_s25 }
 0x82e   : > { %v2208_v34 = vpop.eup %2207 }
 0x82f   : > { %v1123_v35 = vadd.f32 1.0, %v2208_v34  ;;  %v2210_v37 = vpop.eup %2209 }
 0x830   : > { %v2212_v50 = vpop.eup %2211 }
 0x831   : > { %v1125_v36 = vmul.f32 0.5, %v1123_v35  ;;  %v2214_v56 = vpop.eup %2213  ;;  %v1132_v60 = vadd.f32 1.0, %v2212_v50 }
 0x832   : > { %v1133_v3 = vadd.f32 1.0, %v2214_v56 }
 0x833   : > { %v1139_v38 = vmul.f32 %v2210_v37, %v1125_v36  ;;  %v1137_v49 = vmul.f32 %v1125_v36, %v2799_v5  ;;  %v1134_v7 = vmul.f32 0.5, %v1132_v60 }
 0x834   : > { %v1135_v8 = vmul.f32 0.5, %v1133_v3 }
 0x835   : > { %1144 = vrot.lane.b32.xlu1 %v1139_v38, %s2442_s25 }
 0x89f   : > { %v1143_v44 = vpop.permute.xlu0 %1142 }
 0x8a0   : > { %v1148_v48 = vadd.f32 %v1143_v44, %v1136_v45 }
 0x8a2   : > { %2215 = vtanh.f32 %v1148_v48 }
 0x8a7   : > { %v1145_v51 = vpop.permute.xlu1 %1144 }
 0x8a8   : > { %v1149_v59 = vadd.f32 %v1145_v51, %v1137_v49  ;;  %v2216_v4 = vpop.eup %2215 }
 0x8a9   : > { %v2830_v61 = vmul.f32 %v2216_v4, %v1134_v7 }
 0x8aa   : > { %2217 = vtanh.f32 %v1149_v59 }
 0x8b0   : > { %v2218_v58 = vpop.eup %2217 }
 0x8b1   : > { %v2832_v11 = vmul.f32 %v2218_v58, %v1135_v8 }
 0x8b3   : > { %v1165_v57 = vpack.c.bf16 %v2832_v11, %v2830_v61 }
 0x8b5   : > { %1171 = vrot.lane.b32.xlu2 %v1165_v57, %s2442_s25 }
 0x90f   : > { %v1172_v5 = vpop.permute.xlu2 %1171 }
 0x910   : > { %2021 = vmatmul.msk.bf16.vlgmr.msrb.gmra.mxu2 %vm692_vm1, %v1172_v5  ;;  %2022 = vmatmul.msk.bf16.vlgmr.msrb.gmra.mxu3 %vm692_vm1, %v1172_v5 }
 0x993   : > { %v1185_v19 = vpop.f32.mrf.mxu2  ;;  %v1199_v20 = vpop.f32.mrf.mxu3 }
 0x994   : > { %v1186_v22 = vadd.f32 %v1185_v19, %v546_v0  ;;  %v1200_v23 = vadd.f32 %v1199_v20, %v595_v21  ;;  %v550_v0 = vpop.f32.mrf.mxu0  ;;  %v599_v19 = vpop.f32.mrf.mxu1 }
 0x995   : > { %v551_v18 = vadd.f32 %v550_v0, %v2615_v14 }
 0x996   : > { %v1204_v39 = vmul.f32 0.5, %v1186_v22  ;;  %v1214_v36 = vmul.f32 0.5, %v1200_v23  ;;  %v600_v22 = vadd.f32 %v599_v19, %v2617_v15 }
 0x998   : > { %2219 = vtanh.f32 %v1204_v39 }
 0x999   : > { %2221 = vtanh.f32 %v1200_v23 }
 0x99b   : > { %v1187_v47 = vpop.f32.mrf.mxu2  ;;  %v1201_v55 = vpop.f32.mrf.mxu3 }
 0x99c   : > { %v1188_v53 = vadd.f32 %v1187_v47, %v548_v46  ;;  %v1202_v27 = vadd.f32 %v1201_v55, %v597_v62  ;;  %v552_v43 = vpop.f32.mrf.mxu0  ;;  %v601_v24 = vpop.f32.mrf.mxu1 }
 0x99d   : > { %v553_v46 = vadd.f32 %v552_v43, %v2615_v14  ;;  %v602_v62 = vadd.f32 %v601_v24, %v2617_v15 }
 0x99e   : > { %v2220_v25 = vpop.eup %2219  ;;  %v1205_v63 = vmul.f32 0.5, %v1188_v53  ;;  %v1215_v37 = vmul.f32 0.5, %v1202_v27 }
 0x99f   : > { %v1208_v26 = vadd.f32 1.0, %v2220_v25  ;;  %v2222_v29 = vpop.eup %2221 }
 0x9a0   : > { %2223 = vtanh.f32 %v1205_v63 }
 0x9a1   : > { %v1210_v28 = vmul.f32 0.5, %v1208_v26  ;;  %2225 = vtanh.f32 %v1202_v27 }
 0x9a2   : > { %2227 = vtanh.f32 %v1214_v36 }
 0x9a3   : > { %v1224_v30 = vmul.f32 %v2222_v29, %v1210_v28  ;;  %2229 = vtanh.f32 %v1215_v37  ;;  %v1222_v40 = vmul.f32 %v1210_v28, %v1148_v48 }
 0x9a5   : > { %1228 = vrot.lane.b32.xlu0 %v1224_v30, %s2442_s25 }
 0x9a6   : > { %v2224_v31 = vpop.eup %2223 }
 0x9a7   : > { %v1209_v32 = vadd.f32 1.0, %v2224_v31  ;;  %v2226_v34 = vpop.eup %2225 }
 0x9a8   : > { %v2228_v45 = vpop.eup %2227 }
 0x9a9   : > { %v1211_v33 = vmul.f32 0.5, %v1209_v32  ;;  %v2230_v50 = vpop.eup %2229  ;;  %v1218_v56 = vadd.f32 1.0, %v2228_v45 }
 0x9aa   : > { %v1219_v60 = vadd.f32 1.0, %v2230_v50 }
 0x9ab   : > { %v1225_v35 = vmul.f32 %v2226_v34, %v1211_v33  ;;  %v1223_v44 = vmul.f32 %v1211_v33, %v1149_v59  ;;  %v1220_v3 = vmul.f32 0.5, %v1218_v56 }
 0x9ac   : > { %v1221_v4 = vmul.f32 0.5, %v1219_v60 }
 0x9ad   : > { %1230 = vrot.lane.b32.xlu1 %v1225_v35, %s2442_s25 }
 0xa17   : > { %v1229_v38 = vpop.permute.xlu0 %1228 }
 0xa18   : > { %v2845_v41 = vadd.f32 %v1229_v38, %v1222_v40 }
 0xa1a   : > { %2231 = vtanh.f32 %v2845_v41 }
 0xa1f   : > { %v1231_v49 = vpop.permute.xlu1 %1230 }
 0xa20   : > { %v2851_v51 = vadd.f32 %v1231_v49, %v1223_v44  ;;  %v2232_v48 = vpop.eup %2231 }
 0xa21   : > { %v1238_v59 = vmul.f32 %v2232_v48, %v1220_v3 }
 0xa22   : > { %2233 = vtanh.f32 %v2851_v51 }
 0xa28   : > { %v2234_v7 = vpop.eup %2233 }
 0xa29   : > { %v1239_v8 = vmul.f32 %v2234_v7, %v1221_v4 }
 0xa2b   : > { %v1251_v58 = vpack.c.bf16 %v1239_v8, %v1238_v59 }
 0xa2d   : > { %1257 = vrot.lane.b32.xlu2 %v1251_v58, %s2442_s25 }
 0xa35   : > { %1244 = vrot.lane.b32.xlu2 %v1239_v8, %s2442_s25 }
 0xa3d   : > { %1070 = vrot.lane.b32.xlu2 %v2802_v52, %s2442_s25 }
 0xa87   : > { %v1258_v57 = vpop.permute.xlu2 %1257 }
 0xa88   : > { %2023 = vmatmul.msk.bf16.vlgmr.msra.gmra.mxu2 %vm692_vm1, %v1258_v57  ;;  %2024 = vmatmul.msk.bf16.vlgmr.msra.gmra.mxu3 %vm692_vm1, %v1258_v57 }
 0xa8f   : > { %v1245_v5 = vpop.permute.xlu2 %1244 }
 0xa90   : > { %1250 = vst.msk [vmem:[#allocation3 + $0x68] sm:$0xff] %vm692_vm1, %v1245_v5 }
 0xa97   : > { %v1071_v12 = vpop.permute.xlu2 %1070 }
 0xa98   : > { %1077 = vst.msk [vmem:[#allocation3 + $0x40] sm:$0xff] %vm692_vm1, %v1071_v12 }
 0xa9f   : > { %v2932_v12 = vld [vmem:[#allocation3 + $0x40] sm:$0xff] }
 0xb0b   : > { %v1271_v20 = vpop.f32.mrf.mxu2  ;;  %v1285_v21 = vpop.f32.mrf.mxu3 }
 0xb0c   : > { %v1272_v52 = vadd.f32 %v1271_v20, %v551_v18  ;;  %v1286_v23 = vadd.f32 %v1285_v21, %v600_v22 }
 0xb0e   : > { %v1290_v39 = vmul.f32 0.5, %v1272_v52  ;;  %v1300_v15 = vmul.f32 0.5, %v1286_v23 }
 0xb10   : > { %2235 = vtanh.f32 %v1290_v39 }
 0xb11   : > { %2237 = vtanh.f32 %v1286_v23 }
 0xb13   : > { %v1273_v47 = vpop.f32.mrf.mxu2  ;;  %v1287_v55 = vpop.f32.mrf.mxu3 }
 0xb14   : > { %v1274_v53 = vadd.f32 %v1273_v47, %v553_v46  ;;  %v1288_v27 = vadd.f32 %v1287_v55, %v602_v62  ;;  %v2963_v62 = vld [vmem:[%s3134_s4] ss:$0 sm:$0xff] }
 0xb16   : > { %v2236_v25 = vpop.eup %2235  ;;  %v1291_v63 = vmul.f32 0.5, %v1274_v53  ;;  %v1301_v35 = vmul.f32 0.5, %v1288_v27 }
 0xb17   : > { %v1294_v26 = vadd.f32 1.0, %v2236_v25  ;;  %v2238_v29 = vpop.eup %2237 }
 0xb18   : > { %2239 = vtanh.f32 %v1291_v63 }
 0xb19   : > { %v1296_v28 = vmul.f32 0.5, %v1294_v26  ;;  %2241 = vtanh.f32 %v1288_v27 }
 0xb1a   : > { %2243 = vtanh.f32 %v1300_v15 }
 0xb1b   : > { %v1310_v30 = vmul.f32 %v2238_v29, %v1296_v28  ;;  %v1308_v36 = vmul.f32 %v1296_v28, %v2845_v41  ;;  %2245 = vtanh.f32 %v1301_v35 }
 0xb1d   : > { %1314 = vrot.lane.b32.xlu0 %v1310_v30, %s2442_s25 }
 0xb1e   : > { %v2240_v31 = vpop.eup %2239 }
 0xb1f   : > { %v1295_v14 = vadd.f32 1.0, %v2240_v31  ;;  %v2242_v33 = vpop.eup %2241 }
 0xb20   : > { %v2244_v37 = vpop.eup %2243 }
 0xb21   : > { %v1297_v32 = vmul.f32 0.5, %v1295_v14 }
 0xb23   : > { %v1311_v34 = vmul.f32 %v2242_v33, %v1297_v32  ;;  %v1309_v40 = vmul.f32 %v1297_v32, %v2851_v51 }
 0xb25   : > { %1316 = vrot.lane.b32.xlu1 %v1311_v34, %s2442_s25  ;;  %1156 = vrot.lane.b32.xlu0 %v2830_v61, %s2442_s25 }
 0xb2d   : > { %1242 = vrot.lane.b32.xlu1 %v1238_v59, %s2442_s25 }
 0xb35   : > { %1158 = vrot.lane.b32.xlu1 %v2832_v11, %s2442_s25  ;;  %v1304_v11 = vadd.f32 1.0, %v2244_v37 }
 0xb37   : > { %v1306_v42 = vmul.f32 0.5, %v1304_v11 }
 0xb3d   : > { %984 = vrot.lane.b32.xlu1 %v2768_v54, %s2442_s25  ;;  %v2246_v54 = vpop.eup %2245 }
 0xb3e   : > { %v1305_v50 = vadd.f32 1.0, %v2246_v54 }
 0xb40   : > { %v1307_v41 = vmul.f32 0.5, %v1305_v50 }
 0xb45   : > { %900 = vrot.lane.b32.xlu1 %v2736_v9, %s2442_s25 }
 0xb4d   : > { %686 = vrot.lane.b32.xlu1 %v2664_v13, %s2442_s25 }
 0xb8f   : > { %v1315_v61 = vpop.permute.xlu0 %1314 }
 0xb90   : > { %v1320_v38 = vadd.f32 %v1315_v61, %v1308_v36 }
 0xb92   : > { %2247 = vtanh.f32 %v1320_v38 }
 0xb97   : > { %v1317_v44 = vpop.permute.xlu1 %1316  ;;  %v1157_v9 = vpop.permute.xlu0 %1156 }
 0xb98   : > { %v2248_v45 = vpop.eup %2247  ;;  %v1321_v49 = vadd.f32 %v1317_v44, %v1309_v40  ;;  %1163 = vst.msk [vmem:[#allocation3 + $0x50] sm:$0xff] %vm692_vm1, %v1157_v9 }
 0xb99   : > { %v1324_v13 = vmul.f32 %v2248_v45, %v1306_v42 }
 0xb9a   : > { %2249 = vtanh.f32 %v1321_v49 }
 0xb9b   : > { %1328 = vrot.lane.b32.xlu2 %v1324_v13, %s2442_s25 }
 0xb9f   : > { %v1243_v56 = vpop.permute.xlu1 %1242  ;;  %v2883_v60 = vld [vmem:[#allocation3 + $0x50] sm:$0xff] }
 0xba0   : > { %v2250_v48 = vpop.eup %2249  ;;  %1249 = vst.msk [vmem:[#allocation3 + $0x60] sm:$0xff] %vm692_vm1, %v1243_v56  ;;  %1439 = vrot.lane.b32.xlu1 %v2883_v60, %s2443_s23 }
 0xba1   : > { %v1325_v51 = vmul.f32 %v2250_v48, %v1307_v41 }
 0xba3   : > { %1330 = vrot.lane.b32.xlu0 %v1325_v51, %s2442_s25  ;;  %986 = vrot.lane.b32.xlu2 %v2770_v1, %s2442_s25 }
 0xba7   : > { %v1159_v3 = vpop.permute.xlu1 %1158  ;;  %v2902_v1 = vld [vmem:[#allocation3 + $0x60] sm:$0xff] }
 0xba8   : > { %1164 = vst.msk [vmem:[#allocation3 + $0x58] sm:$0xff] %vm692_vm1, %v1159_v3 }
 0xbab   : > { %1072 = vrot.lane.b32.xlu0 %v2804_v17, %s2442_s25  ;;  %812 = vrot.lane.b32.xlu2 %v2700_v6, %s2442_s25 }
 0xbaf   : > { %v985_v4 = vpop.permute.xlu1 %984  ;;  %v2909_v17 = vld [vmem:[#allocation3 + $0x58] sm:$0xff] }
 0xbb0   : > { %991 = vst.msk [vmem:[#allocation3 + $0x30] sm:$0xff] %vm692_vm1, %v985_v4 }
 0xbb3   : > { %898 = vrot.lane.b32.xlu0 %v2734_v2, %s2442_s25  ;;  %688 = vrot.lane.b32.xlu2 %v2666_v16, %s2442_s25  ;;  %v2911_v2 = vld [vmem:[#allocation3 + $0x68] sm:$0xff] }
 0xbb7   : > { %v901_v7 = vpop.permute.xlu1 %900  ;;  %v2917_v16 = vld [vmem:[#allocation3 + $0x30] sm:$0xff] }
 0xbb8   : > { %906 = vst.msk [vmem:[#allocation3 + $0x28] sm:$0xff] %vm692_vm1, %v901_v7 }
 0xbbb   : > { %814 = vrot.lane.b32.xlu0 %v2702_v10, %s2442_s25  ;;  %1391 = vrot.lane.b32.xlu2 %v2902_v1, %s2443_s23  ;;  %s392_s25 = scalar_lea.vmem %s3138_s8, %s1912_s9 }
 0xbbf   : > { %v687_v6 = vpop.permute.xlu1 %686  ;;  %v2921_v10 = vld [vmem:[#allocation3 + $0x28] sm:$0xff] }
 0xbc0   : > { %693 = vst.msk [vmem:[#allocation3] sm:$0xff] %vm692_vm1, %v687_v6 }
 0xbc3   : > { %1441 = vrot.lane.b32.xlu2 %v2909_v17, %s2443_s23  ;;  %1393 = vrot.lane.b32.xlu0 %v2911_v2, %s2443_s23 }
 0xbc7   : > { %v1338_v59 = vld [vmem:[#allocation3] sm:$0xff] }
 0xbcb   : > { %1531 = vrot.lane.b32.xlu2 %v2917_v16, %s2443_s23 }
 0xbd3   : > { %1577 = vrot.lane.b32.xlu2 %v2921_v10, %s2443_s23 }
 0xbdb   : > { %1663 = vrot.lane.b32.xlu2 %v1338_v59, %s2443_s23 }
 0xbf5   : > { %v1329_v8 = vpop.permute.xlu2 %1328 }
 0xbf6   : > { %1335 = vst.msk [vmem:[#allocation3 + $0x70] sm:$0xff] %vm692_vm1, %v1329_v8 }
 0xbfd   : > { %v987_v58 = vpop.permute.xlu2 %986  ;;  %v2927_v57 = vld [vmem:[#allocation3 + $0x70] sm:$0xff] }
 0xbfe   : > { %992 = vst.msk [vmem:[#allocation3 + $0x38] sm:$0xff] %vm692_vm1, %v987_v58  ;;  %1344 = vrot.lane.b32.xlu0 %v2927_v57, %s2443_s23 }
 0xc05   : > { %v813_v5 = vpop.permute.xlu2 %812  ;;  %v2937_v18 = vld [vmem:[#allocation3 + $0x38] sm:$0xff] }
 0xc06   : > { %819 = vst.msk [vmem:[#allocation3 + $0x10] sm:$0xff] %vm692_vm1, %v813_v5  ;;  %1487 = vrot.lane.b32.xlu0 %v2932_v12, %s2443_s23 }
 0xc0d   : > { %v689_v0 = vpop.permute.xlu2 %688  ;;  %v1385_v20 = vld [vmem:[#allocation3 + $0x10] sm:$0xff] }
 0xc0e   : > { %694 = vst.msk [vmem:[#allocation3 + $0x8] sm:$0xff] %vm692_vm1, %v689_v0  ;;  %1533 = vrot.lane.b32.xlu0 %v2937_v18, %s2443_s23 }
 0xc12   : > { %v1440_v31 = vpop.permute.xlu1 %1439 }
 0xc15   : > { %v1331_v19 = vpop.permute.xlu0 %1330  ;;  %v2944_v22 = vld [vmem:[#allocation3 + $0x8] sm:$0xff]  ;;  %v1392_v46 = vpop.permute.xlu2 %1391 }
 0xc16   : > { %1336 = vst.msk [vmem:[#allocation3 + $0x78] sm:$0xff] %vm692_vm1, %v1331_v19  ;;  %1619 = vrot.lane.b32.xlu0 %v1385_v20, %s2443_s23  ;;  %v2953_v55 = vadd.f32 %v1392_v46, %v1385_v20 }
 0xc1d   : > { %v1073_v21 = vpop.permute.xlu0 %1072  ;;  %v1341_v23 = vld [vmem:[#allocation3 + $0x78] sm:$0xff] }
 0xc1e   : > { %1078 = vst.msk [vmem:[#allocation3 + $0x48] sm:$0xff] %vm692_vm1, %v1073_v21  ;;  %1665 = vrot.lane.b32.xlu0 %v2944_v22, %s2443_s23 }
 0xc25   : > { %v899_v52 = vpop.permute.xlu0 %898  ;;  %v1484_v39 = vld [vmem:[#allocation3 + $0x48] sm:$0xff] }
 0xc26   : > { %905 = vst.msk [vmem:[#allocation3 + $0x20] sm:$0xff] %vm692_vm1, %v899_v52  ;;  %1489 = vrot.lane.b32.xlu1 %v1484_v39, %s2443_s23 }
 0xc2d   : > { %v815_v43 = vpop.permute.xlu0 %814  ;;  %v1433_v53 = vld [vmem:[#allocation3 + $0x20] sm:$0xff] }
 0xc2e   : > { %820 = vst.msk [vmem:[#allocation3 + $0x18] sm:$0xff] %vm692_vm1, %v815_v43  ;;  %1346 = vrot.lane.b32.xlu1 %v1341_v23, %s2443_s23  ;;  %v2970_v14 = vadd.f32 %v1440_v31, %v1433_v53 }
 0xc35   : > { %v1386_v24 = vld [vmem:[#allocation3 + $0x18] sm:$0xff]  ;;  %v1394_v47 = vpop.permute.xlu0 %1393 }
 0xc36   : > { %v2955_v25 = vadd.f32 %v1394_v47, %v1386_v24  ;;  %1575 = vrot.lane.b32.xlu1 %v1433_v53, %s2443_s23 }
 0xc38   : > { %2251 = vtanh.f32 %v2955_v25 }
 0xc39   : > { %2253 = vtanh.f32 %v2953_v55 }
 0xc3a   : > { %2255 = vtanh.f32 %v2970_v14 }
 0xc3e   : > { %v2252_v63 = vpop.eup %2251  ;;  %1621 = vrot.lane.b32.xlu1 %v1386_v24, %s2443_s23 }
 0xc3f   : > { %v1402_v26 = vmul.f32 %v2252_v63, %v2963_v62  ;;  %v2254_v27 = vpop.eup %2253 }
 0xc40   : > { %v1401_v29 = vmul.f32 %v2254_v27, %v2963_v62  ;;  %v2256_v32 = vpop.eup %2255 }
 0xc41   : > { %v1406_v28 = vsel %vm481_vm0, %v1402_v26, 0.0  ;;  %v1449_v33 = vmul.f32 %v2256_v32, %v2963_v62 }
 0xc42   : > { %1407 = vadd.xlane.f32.xlu2 %v1406_v28  ;;  %v1403_v30 = vsel %vm481_vm0, %v1401_v29, 0.0 }
 0xc43   : > { %v1451_v34 = vsel %vm481_vm0, %v1449_v33, 0.0 }
 0xc48   : > { %1404 = vadd.xlane.f32.xlu0 %v1403_v30 }
 0xc68   : > { %1452 = vadd.xlane.f32.xlu1 %v1451_v34 }
 0xc70   : > { %v1345_v15 = vpop.permute.xlu0 %1344 }
 0xc71   : > { %v2975_v35 = vadd.f32 %v1345_v15, %v1338_v59 }
 0xc73   : > { %2257 = vtanh.f32 %v2975_v35 }
 0xc78   : > { %v1488_v36 = vpop.permute.xlu0 %1487 }
 0xc79   : > { %v2258_v61 = vpop.eup %2257  ;;  %v2979_v37 = vadd.f32 %v1488_v36, %v2917_v16  ;;  %v1442_v16 = vpop.permute.xlu2 %1441 }
 0xc7a   : > { %v1357_v38 = vmul.f32 %v2258_v61, %v2963_v62  ;;  %v3011_v20 = vadd.f32 %v1442_v16, %v2921_v10 }
 0xc7b   : > { %2259 = vtanh.f32 %v2979_v37 }
 0xc7c   : > { %v1359_v11 = vsel %vm481_vm0, %v1357_v38, 0.0 }
 0xc7d   : > { %1360 = vadd.xlane.f32.xlu1 %v1359_v11 }
 0xc80   : > { %v1534_v40 = vpop.permute.xlu0 %1533 }
 0xc81   : > { %v2260_v54 = vpop.eup %2259  ;;  %v2984_v42 = vadd.f32 %v1534_v40, %v1484_v39 }
 0xc82   : > { %v1497_v44 = vmul.f32 %v2260_v54, %v2963_v62 }
 0xc83   : > { %2261 = vtanh.f32 %v2984_v42 }
 0xc84   : > { %v1499_v9 = vsel %vm481_vm0, %v1497_v44, 0.0 }
 0xc85   : > { %1500 = vadd.xlane.f32.xlu0 %v1499_v9 }
 0xc88   : > { %v1620_v45 = vpop.permute.xlu0 %1619 }
 0xc89   : > { %v2262_v49 = vpop.eup %2261  ;;  %v2990_v13 = vadd.f32 %v1620_v45, %v2902_v1 }
 0xc8a   : > { %v1542_v50 = vmul.f32 %v2262_v49, %v2963_v62 }
 0xc8b   : > { %2263 = vtanh.f32 %v2990_v13 }
 0xc8c   : > { %v1546_v41 = vsel %vm481_vm0, %v1542_v50, 0.0 }
 0xc8d   : > { %1547 = vadd.xlane.f32.xlu0 %v1546_v41 }
 0xc90   : > { %v1666_v56 = vpop.permute.xlu0 %1665 }
 0xc91   : > { %v2264_v48 = vpop.eup %2263  ;;  %v2995_v51 = vadd.f32 %v1666_v56, %v1341_v23 }
 0xc92   : > { %v1629_v3 = vmul.f32 %v2264_v48, %v2963_v62 }
 0xc93   : > { %2265 = vtanh.f32 %v2995_v51 }
 0xc94   : > { %v1631_v4 = vsel %vm481_vm0, %v1629_v3, 0.0 }
 0xc95   : > { %1632 = vadd.xlane.f32.xlu0 %v1631_v4 }
 0xc98   : > { %v1490_v7 = vpop.permute.xlu1 %1489 }
 0xc99   : > { %v2266_v1 = vpop.eup %2265  ;;  %v3001_v6 = vadd.f32 %v1490_v7, %v2937_v18  ;;  %v1532_v18 = vpop.permute.xlu2 %1531 }
 0xc9a   : > { %v1674_v59 = vmul.f32 %v2266_v1, %v2963_v62  ;;  %v3021_v23 = vadd.f32 %v1532_v18, %v2932_v12 }
 0xc9b   : > { %2267 = vtanh.f32 %v3001_v6 }
 0xc9c   : > { %v1678_v8 = vsel %vm481_vm0, %v1674_v59, 0.0 }
 0xc9d   : > { %1679 = vadd.xlane.f32.xlu0 %v1678_v8 }
 0xca0   : > { %v1347_v58 = vpop.permute.xlu1 %1346 }
 0xca1   : > { %v2268_v5 = vpop.eup %2267  ;;  %v3007_v0 = vadd.f32 %v1347_v58, %v2944_v22  ;;  %v1578_v24 = vpop.permute.xlu2 %1577 }
 0xca2   : > { %v1498_v19 = vmul.f32 %v2268_v5, %v2963_v62  ;;  %v3032_v12 = vadd.f32 %v1578_v24, %v2909_v17 }
 0xca3   : > { %2269 = vtanh.f32 %v3007_v0 }
 0xca4   : > { %v1502_v21 = vsel %vm481_vm0, %v1498_v19, 0.0  ;;  %2271 = vtanh.f32 %v3011_v20 }
 0xca5   : > { %1503 = vadd.xlane.f32.xlu1 %v1502_v21 }
 0xca8   : > { %v1576_v52 = vpop.permute.xlu1 %1575 }
 0xca9   : > { %v2270_v39 = vpop.eup %2269  ;;  %v3017_v43 = vadd.f32 %v1576_v52, %v2883_v60  ;;  %v1664_v30 = vpop.permute.xlu2 %1663 }
 0xcaa   : > { %v1358_v22 = vmul.f32 %v2270_v39, %v2963_v62  ;;  %v2272_v46 = vpop.eup %2271  ;;  %v3041_v17 = vadd.f32 %v1664_v30, %v2927_v57 }
 0xcab   : > { %2273 = vtanh.f32 %v3017_v43  ;;  %v1450_v53 = vmul.f32 %v2272_v46, %v2963_v62 }
 0xcac   : > { %v1362_v10 = vsel %vm481_vm0, %v1358_v22, 0.0  ;;  %2275 = vtanh.f32 %v3021_v23 }
 0xcad   : > { %1363 = vadd.xlane.f32.xlu2 %v1362_v10  ;;  %v1454_v28 = vsel %vm481_vm0, %v1450_v53, 0.0 }
 0xcb0   : > { %v1622_v47 = vpop.permute.xlu1 %1621 }
 0xcb1   : > { %v2274_v63 = vpop.eup %2273  ;;  %v3028_v60 = vadd.f32 %v1622_v47, %v2911_v2 }
 0xcb2   : > { %v1585_v26 = vmul.f32 %v2274_v63, %v2963_v62  ;;  %v2276_v29 = vpop.eup %2275 }
 0xcb3   : > { %2277 = vtanh.f32 %v3028_v60  ;;  %v1541_v2 = vmul.f32 %v2276_v29, %v2963_v62 }
 0xcb4   : > { %v1587_v27 = vsel %vm481_vm0, %v1585_v26, 0.0  ;;  %2279 = vtanh.f32 %v3032_v12 }
 0xcb5   : > { %1588 = vadd.xlane.f32.xlu1 %v1587_v27  ;;  %1455 = vadd.xlane.f32.xlu2 %v1454_v28  ;;  %v1543_v34 = vsel %vm481_vm0, %v1541_v2, 0.0  ;;  %2281 = vtanh.f32 %v3041_v17  ;;  %v1408_v48 = vpop.xlane.xlu2 %1407 }
 0xcb9   : > { %v2278_v31 = vpop.eup %2277 }
 0xcba   : > { %v1630_v32 = vmul.f32 %v2278_v31, %v2963_v62  ;;  %v2280_v15 = vpop.eup %2279 }
 0xcbb   : > { %v1586_v36 = vmul.f32 %v2280_v15, %v2963_v62  ;;  %v2282_v38 = vpop.eup %2281  ;;  %v1405_v45 = vpop.xlane.xlu0 %1404 }
 0xcbc   : > { %v1634_v33 = vsel %vm481_vm0, %v1630_v32, 0.0  ;;  %v1673_v11 = vmul.f32 %v2282_v38, %v2963_v62 }
 0xcbd   : > { %1635 = vadd.xlane.f32.xlu1 %v1634_v33  ;;  %1544 = vadd.xlane.f32.xlu2 %v1543_v34  ;;  %v1590_v61 = vsel %vm481_vm0, %v1586_v36, 0.0 }
 0xcbe   : > { %v1675_v57 = vsel %vm481_vm0, %v1673_v11, 0.0 }
 0xcc5   : > { %1591 = vadd.xlane.f32.xlu2 %v1590_v61 }
 0xccd   : > { %1676 = vadd.xlane.f32.xlu2 %v1675_v57 }
 0xcdb   : > { %v1453_v40 = vpop.xlane.xlu1 %1452 }
 0xcf0   : > { %v1361_v54 = vpop.xlane.xlu1 %1360 }
 0xcf1   : > { %v1365_v44 = vsub.f32 -inf, %v1361_v54  ;;  %v1371_v49 = vsub.f32 %v1361_v54, %v1361_v54  ;;  %v1409_v50 = vmax.f32 %v1361_v54, %v1405_v45 }
 0xcf3   : > { %v1367_v9 = vmul.f32 1.442695, %v1365_v44  ;;  %v1373_v41 = vmul.f32 1.442695, %v1371_v49  ;;  %v1411_v56 = vsub.f32 %v1361_v54, %v1409_v50  ;;  %v1417_v3 = vsub.f32 %v1405_v45, %v1409_v50 }
 0xcf4   : > { %v1457_v4 = vmax.f32 %v1409_v50, %v1453_v40 }
 0xcf5   : > { %2283 = vpow2.f32 %v1367_v9  ;;  %v1413_v1 = vmul.f32 1.442695, %v1411_v56  ;;  %v1419_v59 = vmul.f32 1.442695, %v1417_v3 }
 0xcf6   : > { %2285 = vpow2.f32 %v1373_v41  ;;  %v1459_v8 = vsub.f32 %v1409_v50, %v1457_v4  ;;  %v1465_v10 = vsub.f32 %v1453_v40, %v1457_v4 }
 0xcf7   : > { %2287 = vpow2.f32 %v1413_v1 }
 0xcf8   : > { %v1501_v62 = vpop.xlane.xlu0 %1500  ;;  %2289 = vpow2.f32 %v1419_v59  ;;  %v1461_v22 = vmul.f32 1.442695, %v1459_v8  ;;  %v1467_v30 = vmul.f32 1.442695, %v1465_v10 }
 0xcf9   : > { %v3050_v58 = vmax.f32 %v1457_v4, %v1501_v62 }
 0xcfb   : > { %v2284_v7 = vpop.eup %2283  ;;  %v1507_v63 = vsub.f32 %v1457_v4, %v3050_v58  ;;  %v1513_v33 = vsub.f32 %v1501_v62, %v3050_v58 }
 0xcfc   : > { %v1377_v16 = vmul.f32 0.0, %v2284_v7  ;;  %v2286_v19 = vpop.eup %2285 }
 0xcfd   : > { %v2288_v26 = vpop.eup %2287  ;;  %v1381_v31 = vmul.f32 %v2286_v19, %v2975_v35  ;;  %v1509_v32 = vmul.f32 1.442695, %v1507_v63  ;;  %v1515_v9 = vmul.f32 1.442695, %v1513_v33 }
 0xcfe   : > { %v1379_v39 = vadd.f32 %v2286_v19, %v1377_v16  ;;  %v2290_v2 = vpop.eup %2289 }
 0xcff   : > { %v1383_v44 = vadd.f32 %v1381_v31, %v1377_v16 }
 0xd00   : > { %v1423_v29 = vmul.f32 %v2288_v26, %v1379_v39  ;;  %v1548_v49 = vpop.xlane.xlu0 %1547  ;;  %v1429_v39 = vmul.f32 %v2290_v2, %v2953_v55 }
 0xd02   : > { %v1425_v61 = vadd.f32 %v2290_v2, %v1423_v29 }
 0xd18   : > { %v1504_v34 = vpop.xlane.xlu1 %1503 }
 0xd20   : > { %v1364_v5 = vpop.xlane.xlu2 %1363 }
 0xd21   : > { %v1366_v18 = vsub.f32 -inf, %v1364_v5  ;;  %v1372_v21 = vsub.f32 %v1364_v5, %v1364_v5  ;;  %v1410_v52 = vmax.f32 %v1364_v5, %v1408_v48 }
 0xd23   : > { %v1369_v46 = vmul.f32 1.442695, %v1366_v18  ;;  %v1375_v24 = vmul.f32 1.442695, %v1372_v21  ;;  %v1412_v47 = vsub.f32 %v1364_v5, %v1410_v52  ;;  %v1418_v53 = vsub.f32 %v1408_v48, %v1410_v52 }
 0xd25   : > { %2291 = vpow2.f32 %v1369_v46  ;;  %v1415_v27 = vmul.f32 1.442695, %v1412_v47  ;;  %v1421_v28 = vmul.f32 1.442695, %v1418_v53 }
 0xd26   : > { %2293 = vpow2.f32 %v1375_v24  ;;  %v1427_v24 = vmul.f32 %v2288_v26, %v1383_v44 }
 0xd27   : > { %2295 = vpow2.f32 %v1461_v22 }
 0xd28   : > { %2297 = vpow2.f32 %v1415_v27  ;;  %v1456_v15 = vpop.xlane.xlu2 %1455  ;;  %v1589_v19 = vpop.xlane.xlu1 %1588 }
 0xd29   : > { %2299 = vpow2.f32 %v1421_v28  ;;  %v1458_v36 = vmax.f32 %v1410_v52, %v1456_v15 }
 0xd2a   : > { %2301 = vpow2.f32 %v1467_v30 }
 0xd2b   : > { %v2292_v38 = vpop.eup %2291  ;;  %v1460_v11 = vsub.f32 %v1410_v52, %v1458_v36  ;;  %v1466_v57 = vsub.f32 %v1456_v15, %v1458_v36  ;;  %v1506_v40 = vmax.f32 %v1458_v36, %v1504_v34  ;;  %2303 = vpow2.f32 %v1509_v32 }
 0xd2c   : > { %v2294_v54 = vpop.eup %2293  ;;  %v1378_v45 = vmul.f32 0.0, %v2292_v38  ;;  %v1431_v15 = vadd.f32 %v1429_v39, %v1427_v24  ;;  %v1633_v38 = vpop.xlane.xlu0 %1632 }
 0xd2d   : > { %v3055_v35 = vpop.eup %2295  ;;  %v1382_v50 = vmul.f32 %v2294_v54, %v3007_v0  ;;  %v1463_v41 = vmul.f32 1.442695, %v1460_v11  ;;  %v1469_v56 = vmul.f32 1.442695, %v1466_v57  ;;  %v1508_v48 = vsub.f32 %v1458_v36, %v1506_v40 }
 0xd2e   : > { %v2298_v3 = vpop.eup %2297  ;;  %v1471_v4 = vmul.f32 %v3055_v35, %v1425_v61  ;;  %v1380_v7 = vadd.f32 %v2294_v54, %v1378_v45  ;;  %v1514_v1 = vsub.f32 %v1504_v34, %v1506_v40  ;;  %v3059_v62 = vmax.f32 %v1506_v40, %v1548_v49 }
 0xd2f   : > { %v2300_v59 = vpop.eup %2299  ;;  %v1384_v16 = vadd.f32 %v1382_v50, %v1378_v45  ;;  %2305 = vpow2.f32 %v1463_v41  ;;  %v1511_v8 = vmul.f32 1.442695, %v1508_v48 }
 0xd30   : > { %v1424_v5 = vmul.f32 %v2298_v3, %v1380_v7  ;;  %2307 = vpow2.f32 %v1469_v56  ;;  %v1517_v18 = vmul.f32 1.442695, %v1514_v1  ;;  %v1545_v21 = vpop.xlane.xlu2 %1544  ;;  %v1552_v0 = vsub.f32 %v1506_v40, %v3059_v62  ;;  %v2302_v52 = vpop.eup %2301 }
 0xd31   : > { %v1428_v22 = vmul.f32 %v2298_v3, %v1384_v16  ;;  %v1549_v10 = vmax.f32 %v3050_v58, %v1545_v21  ;;  %v3064_v46 = vpop.eup %2303  ;;  %v1473_v47 = vadd.f32 %v2302_v52, %v1471_v4  ;;  %2309 = vpow2.f32 %v1515_v9 }
 0xd32   : > { %v1430_v53 = vmul.f32 %v2300_v59, %v2955_v25  ;;  %2311 = vpow2.f32 %v1511_v8  ;;  %v1426_v29 = vadd.f32 %v2300_v59, %v1424_v5  ;;  %v1555_v30 = vmul.f32 1.442695, %v1552_v0 }
 0xd33   : > { %v1551_v63 = vsub.f32 %v3050_v58, %v1549_v10  ;;  %v1557_v27 = vsub.f32 %v1545_v21, %v1549_v10  ;;  %v1593_v28 = vmax.f32 %v1549_v10, %v1589_v19  ;;  %2313 = vpow2.f32 %v1517_v18 }
 0xd34   : > { %v1558_v55 = vsub.f32 %v1548_v49, %v3059_v62  ;;  %v1432_v31 = vadd.f32 %v1430_v53, %v1428_v22  ;;  %v1519_v25 = vmul.f32 %v3064_v46, %v1473_v47  ;;  %v1475_v56 = vmul.f32 %v3055_v35, %v1431_v15 }
 0xd35   : > { %v2306_v2 = vpop.eup %2305  ;;  %v1553_v32 = vmul.f32 1.442695, %v1551_v63  ;;  %v1559_v33 = vmul.f32 1.442695, %v1557_v27  ;;  %v1595_v34 = vsub.f32 %v1549_v10, %v1593_v28  ;;  %v1601_v61 = vsub.f32 %v1589_v19, %v1593_v28 }
 0xd36   : > { %v2308_v26 = vpop.eup %2307  ;;  %v1472_v36 = vmul.f32 %v2306_v2, %v1426_v29  ;;  %v1476_v58 = vmul.f32 %v2306_v2, %v1432_v31  ;;  %v3071_v9 = vmax.f32 %v1593_v28, %v1633_v38  ;;  %v1561_v49 = vmul.f32 1.442695, %v1558_v55  ;;  %v1680_v29 = vpop.xlane.xlu0 %1679 }
 0xd37   : > { %v1478_v11 = vmul.f32 %v2308_v26, %v3011_v20  ;;  %2315 = vpow2.f32 %v1553_v32  ;;  %v2310_v57 = vpop.eup %2309  ;;  %v1597_v54 = vmul.f32 1.442695, %v1595_v34  ;;  %v1477_v48 = vmul.f32 %v2302_v52, %v2970_v14  ;;  %v1636_v20 = vpop.xlane.xlu1 %1635 }
 0xd38   : > { %v1474_v40 = vadd.f32 %v2308_v26, %v1472_v36  ;;  %2317 = vpow2.f32 %v1555_v30  ;;  %v1592_v44 = vpop.xlane.xlu2 %1591  ;;  %v2312_v45 = vpop.eup %2311  ;;  %v1603_v4 = vmul.f32 1.442695, %v1601_v61  ;;  %v1521_v8 = vadd.f32 %v2310_v57, %v1519_v25 }
 0xd39   : > { %2319 = vpow2.f32 %v1559_v33  ;;  %v1594_v50 = vmax.f32 %v3059_v62, %v1592_v44  ;;  %v2314_v41 = vpop.eup %2313  ;;  %v1480_v7 = vadd.f32 %v1478_v11, %v1476_v58  ;;  %v1639_v19 = vsub.f32 %v1593_v28, %v3071_v9 }
 0xd3a   : > { %v1520_v3 = vmul.f32 %v2312_v45, %v1474_v40  ;;  %2321 = vpow2.f32 %v1597_v54  ;;  %v1479_v39 = vadd.f32 %v1477_v48, %v1475_v56  ;;  %v1645_v24 = vsub.f32 %v1633_v38, %v3071_v9 }
 0xd3b   : > { %v1596_v1 = vsub.f32 %v3059_v62, %v1594_v50  ;;  %v1602_v59 = vsub.f32 %v1592_v44, %v1594_v50  ;;  %v1638_v16 = vmax.f32 %v1594_v50, %v1636_v20  ;;  %2323 = vpow2.f32 %v1561_v49 }
 0xd3c   : > { %v1522_v5 = vadd.f32 %v2314_v41, %v1520_v3  ;;  %2325 = vpow2.f32 %v1603_v4  ;;  %v1524_v10 = vmul.f32 %v2312_v45, %v1480_v7  ;;  %v1641_v27 = vmul.f32 1.442695, %v1639_v19  ;;  %v2058_v3 = vld [vmem:[%s3135_s5 + $0x8] sm:$0xff] }
 0xd3d   : > { %v2316_v18 = vpop.eup %2315  ;;  %v1599_v21 = vmul.f32 1.442695, %v1596_v1  ;;  %v1605_v0 = vmul.f32 1.442695, %v1602_v59  ;;  %v1640_v52 = vsub.f32 %v1594_v50, %v1638_v16  ;;  %v1646_v62 = vsub.f32 %v1636_v20, %v1638_v16  ;;  %1767 = vmatpush.bf16.msrb.mxu2 %v2058_v3 }
 0xd3e   : > { %v2318_v35 = vpop.eup %2317  ;;  %v1563_v14 = vmul.f32 %v2316_v18, %v1521_v8  ;;  %v1526_v30 = vmul.f32 %v2314_v41, %v3001_v6  ;;  %v1523_v31 = vmul.f32 %v3064_v46, %v1479_v39  ;;  %v1525_v32 = vmul.f32 %v2310_v57, %v2979_v37 }
 0xd3f   : > { %v2320_v22 = vpop.eup %2319  ;;  %2327 = vpow2.f32 %v1599_v21  ;;  %v1564_v53 = vmul.f32 %v2318_v35, %v1522_v5  ;;  %v1643_v63 = vmul.f32 1.442695, %v1640_v52  ;;  %v1649_v55 = vmul.f32 1.442695, %v1646_v62 }
 0xd40   : > { %v1565_v47 = vadd.f32 %v2320_v22, %v1563_v14  ;;  %v1677_v28 = vpop.xlane.xlu2 %1676  ;;  %2329 = vpow2.f32 %v1605_v0  ;;  %v2322_v2 = vpop.eup %2321  ;;  %v1682_v33 = vmax.f32 %v1638_v16, %v1680_v29  ;;  %v1528_v15 = vadd.f32 %v1526_v30, %v1524_v10 }
 0xd41   : > { %v1681_v34 = vmax.f32 %v3071_v9, %v1677_v28  ;;  %v2324_v26 = vpop.eup %2323  ;;  %2331 = vpow2.f32 %v1643_v63  ;;  %v1647_v61 = vmul.f32 1.442695, %v1645_v24  ;;  %v1527_v54 = vadd.f32 %v1525_v32, %v1523_v31 }
 0xd42   : > { %v1607_v36 = vmul.f32 %v2322_v2, %v1565_v47  ;;  %v2326_v25 = vpop.eup %2325  ;;  %v1566_v38 = vadd.f32 %v2324_v26, %v1564_v53  ;;  %v1684_v58 = vsub.f32 %v1638_v16, %v1682_v33  ;;  %v1690_v11 = vsub.f32 %v1680_v29, %v1682_v33  ;;  %v2057_v16 = vld [vmem:[%s3135_s5] sm:$0xff] }
 0xd43   : > { %2333 = vpow2.f32 %v1641_v27  ;;  %v1683_v40 = vsub.f32 %v3071_v9, %v1681_v34  ;;  %v1689_v46 = vsub.f32 %v1677_v28, %v1681_v34  ;;  %v1568_v50 = vmul.f32 %v2318_v35, %v1528_v15  ;;  %1768 = vmatpush.bf16.msrb.mxu2 %v2057_v16 }
 0xd44   : > { %2335 = vpow2.f32 %v1649_v55  ;;  %v1687_v57 = vmul.f32 1.442695, %v1684_v58  ;;  %v1693_v44 = vmul.f32 1.442695, %v1690_v11  ;;  %v1609_v49 = vadd.f32 %v2326_v25, %v1607_v36 }
 0xd45   : > { %v2328_v6 = vpop.eup %2327  ;;  %2337 = vpow2.f32 %v1647_v61  ;;  %v1685_v41 = vmul.f32 1.442695, %v1683_v40  ;;  %v1691_v48 = vmul.f32 1.442695, %v1689_v46  ;;  %v1567_v4 = vmul.f32 %v2316_v18, %v1527_v54 }
 0xd46   : > { %v1608_v37 = vmul.f32 %v2328_v6, %v1566_v38  ;;  %v2330_v45 = vpop.eup %2329  ;;  %2339 = vpow2.f32 %v1687_v57  ;;  %v1569_v9 = vmul.f32 %v2320_v22, %v3021_v23  ;;  %v1570_v7 = vmul.f32 %v2324_v26, %v2984_v42 }
 0xd47   : > { %v2332_v20 = vpop.eup %2331  ;;  %2341 = vpow2.f32 %v1693_v44  ;;  %v1614_v23 = vmul.f32 %v2330_v45, %v3032_v12  ;;  %v1613_v63 = vmul.f32 %v2326_v25, %v3017_v43 }
 0xd48   : > { %v1610_v56 = vadd.f32 %v2330_v45, %v1608_v37  ;;  %2343 = vpow2.f32 %v1685_v41  ;;  %v1572_v5 = vadd.f32 %v1570_v7, %v1568_v50  ;;  %v1571_v18 = vadd.f32 %v1569_v9, %v1567_v4  ;;  %v2122_v4 = vld [vmem:[%s3136_s6] ss:$0 sm:$0xff] }
 0xd49   : > { %v2334_v1 = vpop.eup %2333  ;;  %2345 = vpow2.f32 %v1691_v48 }
 0xd4a   : > { %v1652_v59 = vmul.f32 %v2332_v20, %v1610_v56  ;;  %v2336_v8 = vpop.eup %2335  ;;  %v1651_v19 = vmul.f32 %v2334_v1, %v1609_v49  ;;  %v1612_v35 = vmul.f32 %v2328_v6, %v1572_v5  ;;  %v1611_v10 = vmul.f32 %v2322_v2, %v1571_v18 }
 0xd4b   : > { %v2338_v0 = vpop.eup %2337  ;;  %v1658_v12 = vmul.f32 %v2336_v8, %v3028_v60 }
 0xd4c   : > { %v1654_v21 = vadd.f32 %v2336_v8, %v1652_v59  ;;  %v2340_v42 = vpop.eup %2339  ;;  %v1653_v52 = vadd.f32 %v2338_v0, %v1651_v19  ;;  %v1616_v62 = vadd.f32 %v1614_v23, %v1612_v35  ;;  %v1615_v28 = vadd.f32 %v1613_v63, %v1611_v10  ;;  %v1775_v23 = vld [vmem:[%s386_s11] sm:$0xff] }
 0xd4d   : > { %v2342_v39 = vpop.eup %2341  ;;  %v1657_v2 = vmul.f32 %v2338_v0, %v2990_v13 }
 0xd4e   : > { %v1696_v14 = vmul.f32 %v2340_v42, %v1654_v21  ;;  %v2344_v22 = vpop.eup %2343  ;;  %v1656_v29 = vmul.f32 %v2332_v20, %v1616_v62  ;;  %v1655_v31 = vmul.f32 %v2334_v1, %v1615_v28  ;;  %v1702_v36 = vmul.f32 %v2342_v39, %v2995_v51 }
 0xd4f   : > { %v1695_v47 = vmul.f32 %v2344_v22, %v1653_v52  ;;  %v2346_v53 = vpop.eup %2345 }
 0xd50   : > { %v1698_v24 = vadd.f32 %v2342_v39, %v1696_v14  ;;  %v1660_v55 = vadd.f32 %v1658_v12, %v1656_v29  ;;  %v1659_v43 = vadd.f32 %v1657_v2, %v1655_v31  ;;  %v1701_v60 = vmul.f32 %v2346_v53, %v3041_v17 }
 0xd51   : > { %v1697_v27 = vadd.f32 %v2346_v53, %v1695_v47 }
 0xd52   : > { %2347 = vrcp.f32 %v1698_v24  ;;  %v1700_v15 = vmul.f32 %v2340_v42, %v1660_v55  ;;  %v1731_v61 = vand.u32 2147483648, %v1698_v24  ;;  %v1729_v58 = vand.u32 2147483647, %v1698_v24 }
 0xd53   : > { %2349 = vrcp.f32 %v1697_v27  ;;  %v1699_v11 = vmul.f32 %v2344_v22, %v1659_v43  ;;  %v1716_v6 = vand.u32 2147483648, %v1697_v27  ;;  %vm1725_vm3 = vweird.f32 %v1698_v24 }
 0xd54   : > { %v1714_v46 = vand.u32 2147483647, %v1697_v27  ;;  %v1704_v54 = vadd.f32 %v1702_v36, %v1700_v15  ;;  %v1732_v37 = vor.u32 1.1754944e-38, %v1731_v61  ;;  %vm1710_vm6 = vweird.f32 %v1697_v27 }
 0xd55   : > { %vm1730_vm7 = vcmp.eq.f32.partialorder %v1729_v58, 8.507059e+37  ;;  %v1717_v44 = vor.u32 1.1754944e-38, %v1716_v6  ;;  %v1703_v49 = vadd.f32 %v1701_v60, %v1699_v11 }
 0xd56   : > { %vm1715_vm9 = vcmp.eq.f32.partialorder %v1714_v46, 8.507059e+37 }
 0xd58   : > { %v2348_v30 = vpop.eup %2347 }
 0xd59   : > { %v1721_v32 = vmul.f32 %v2348_v30, %v1698_v24  ;;  %v2350_v33 = vpop.eup %2349  ;;  %vm1726_vm2 = vweird.f32 %v2348_v30  ;;  %v1776_v24 = vld [vmem:[%s386_s11 + $0x8] sm:$0xff] }
 0xd5a   : > { %v1706_v26 = vmul.f32 %v2350_v33, %v1697_v27  ;;  %vm1711_vm4 = vweird.f32 %v2350_v33  ;;  %vm1727_vm5 = vmor %vm1725_vm3, %vm1726_vm2 }
 0xd5b   : > { %v1722_v34 = vsub.f32 1.0, %v1721_v32  ;;  %vm1712_vm8 = vmor %vm1710_vm6, %vm1711_vm4 }
 0xd5c   : > { %v1707_v25 = vsub.f32 1.0, %v1706_v26 }
 0xd5d   : > { %v1723_v38 = vmul.f32 %v2348_v30, %v1722_v34 }
 0xd5e   : > { %v1708_v40 = vmul.f32 %v2350_v33, %v1707_v25 }
 0xd5f   : > { %v1724_v13 = vadd.f32 %v2348_v30, %v1723_v38 }
 0xd60   : > { %v1709_v57 = vadd.f32 %v2350_v33, %v1708_v40 }
 0xd61   : > { %v1728_v51 = vsel %vm1727_vm5, %v2348_v30, %v1724_v13 }
 0xd62   : > { %v1733_v45 = vsel %vm1730_vm7, %v1732_v37, %v1728_v51  ;;  %v1713_v50 = vsel %vm1712_vm8, %v2350_v33, %v1709_v57 }
 0xd63   : > { %v1734_v17 = vmul.f32 %v1733_v45, %v1704_v54  ;;  %v1718_v41 = vsel %vm1715_vm9, %v1717_v44, %v1713_v50 }
 0xd64   : > { %v1719_v56 = vmul.f32 %v1718_v41, %v1703_v49 }
 0xd65   : > { %2351 = vtanh.f32 %v1734_v17 }
 0xd66   : > { %2353 = vtanh.f32 %v1719_v56 }
 0xd6b   : > { %v2352_v48 = vpop.eup %2351 }
 0xd6c   : > { %v2354_v3 = vpop.eup %2353 }
 0xd6d   : > { %v1737_v20 = vpack.c.bf16 %v2352_v48, %v2354_v3 }
 0xd6f   : > { %2033 = vmatmul.msk.bf16.vlgmr.msrb.gmra.mxu2 %vm481_vm0, %v1737_v20 }
 0xdf2   : > { %v1770_v9 = vpop.f32.mrf.mxu2 }
 0xdf3   : > { %v1771_v7 = vadd.f32 %v2122_v4, %v1770_v9 }
 0xdf5   : > { %v1783_v1 = vand.u32 2147483647, %v1771_v7  ;;  %v1777_v42 = vmax.f32 %v1771_v7, 0.0  ;;  %v1779_v39 = vmul.f32 %v1775_v23, %v1771_v7 }
 0xdf7   : > { %v1785_v59 = vsub.f32 0.0, %v1783_v1  ;;  %v1781_v10 = vsub.f32 %v1777_v42, %v1779_v39 }
 0xdf9   : > { %v1787_v16 = vmul.f32 1.442695, %v1785_v59 }
 0xdfa   : > { %v1772_v8 = vpop.f32.mrf.mxu2 }
 0xdfb   : > { %2355 = vpow2.f32 %v1787_v16  ;;  %v1773_v5 = vadd.f32 %v2122_v4, %v1772_v8 }
 0xdfd   : > { %v1784_v19 = vand.u32 2147483647, %v1773_v5  ;;  %v1778_v53 = vmax.f32 %v1773_v5, 0.0  ;;  %v1780_v63 = vmul.f32 %v1776_v24, %v1773_v5 }
 0xdff   : > { %v1786_v21 = vsub.f32 0.0, %v1784_v19  ;;  %v1782_v29 = vsub.f32 %v1778_v53, %v1780_v63 }
 0xe01   : > { %v2356_v0 = vpop.eup %2355  ;;  %v1789_v18 = vmul.f32 1.442695, %v1786_v21 }
 0xe02   : > { %v1791_v35 = vadd.f32 1.0, %v2356_v0 }
 0xe03   : > { %2357 = vpow2.f32 %v1789_v18 }
 0xe04   : > { %2359 = vlog2.f32 %v1791_v35 }
 0xe09   : > { %v2358_v14 = vpop.eup %2357 }
 0xe0a   : > { %v2360_v52 = vpop.eup %2359  ;;  %v1792_v22 = vadd.f32 1.0, %v2358_v14 }
 0xe0b   : > { %v1794_v62 = vmul.f32 0.6931472, %v2360_v52 }
 0xe0c   : > { %2361 = vlog2.f32 %v1792_v22 }
 0xe0d   : > { %v1797_v47 = vadd.f32 %v1794_v62, %v1781_v10 }
 0xe0f   : > { %v1800_v27 = vsel %vm1799_vm10, %v1797_v47, 0.0 }
 0xe10   : > { %1801 = vadd.xlane.f32.xlu1 %v1800_v27 }
 0xe12   : > { %v2362_v28 = vpop.eup %2361 }
 0xe13   : > { %v1796_v12 = vmul.f32 0.6931472, %v2362_v28 }
 0xe15   : > { %v1798_v30 = vadd.f32 %v1796_v12, %v1782_v29 }
 0xe17   : > { %v1803_v55 = vsel %vm1799_vm10, %v1798_v30, 0.0 }
 0xe18   : > { %1804 = vadd.xlane.f32.xlu2 %v1803_v55 }
 0xe83   : > { %v1802_v31 = vpop.xlane.xlu1 %1801 }
 0xe84   : > { %1807 = vst.msk [vmem:[%s392_s25] sm:$0xff] %vm1806_vm11, %v1802_v31 }
 0xe8b   : > { %v1805_v32 = vpop.xlane.xlu2 %1804 }
 0xe8c   : > { %1808 = vst.msk [vmem:[%s392_s25 + $0x8] sm:$0xff] %vm1806_vm11, %v1805_v32 }
 0xe8d PF: > { %p19_p0 = scmp.ge.s32.totalorder %s2509_s10, 4   ;;  %s3145_s27 = smov %s2423_s28 }
 0xe8e   : > { %s3146_s28 = smov %s2427_s29  ;;  %s3147_s29 = smov %s2519_s13 }
 0xe8f   : > { %s3148_s30 = smov %s2509_s10  ;;  %21 = sbr.rel (!%p19_p0) target bundleno = 4 (0x4), region = 111 }
 0xe94   :  { %1831 = vsyncpa [#allocation5], 1 }
 0xe95   :  { %1833 = vsyncpa [#allocation5 + $0x1], 1 }
 0xe96   :  { %1834 = vsyncpa [#allocation7], 1 }

</bundles_post_ra>
